<compile_context>
chip_gen: v7x
topology: tpu7x:2x2x1
jax: 0.10.0
libtpu: 0.0.40
codegen_flags: <defaults>
</compile_context>

<pallas_src>
import functools

import jax
import jax.numpy as jnp
from jax.experimental import pallas as pl
from jax.experimental.pallas import tpu as pltpu

IN_DIM, H1, H2, OUT_DIM = 2, 512, 128, 1


def mlp_kernel(x_ref, w1_ref, b1_ref, w2_ref, b2_ref, w3_ref, b3_ref, o_ref):
    # x_ref: (IN_DIM, tm)  batch on lanes
    x = x_ref[...]

    # ---- fc1 + relu: K=2 -> VPU (two fused scaled adds), skip the MXU ----
    w1 = w1_ref[...]                                   # (H1, IN_DIM)
    h1 = w1[:, 0:1] * x[0:1, :] + w1[:, 1:2] * x[1:2, :] + b1_ref[...]
    h1 = jnp.maximum(h1, 0.0)                          # (H1, tm) f32

    # ---- fc2 + relu: the real matmul, bf16 inputs on the MXU, f32 accum ----
    h2 = jnp.dot(w2_ref[...], h1.astype(jnp.bfloat16),
                 preferred_element_type=jnp.float32)   # (H2, tm)
    h2 = jnp.maximum(h2 + b2_ref[...], 0.0)

    # ---- fc3 + sigmoid: N=1 -> VPU multiply + sublane (XLU) reduce ----
    logits = jnp.sum(w3_ref[...] * h2, axis=0, keepdims=True) + b3_ref[...]
    o_ref[...] = jax.nn.sigmoid(logits).astype(o_ref.dtype)   # (1, tm) lane-dense


def mlp_forward(x, params, *, tile_m=512):
    """x: (B, IN_DIM) f32  ->  (B, OUT_DIM) f32."""
    w1, b1, w2, b2, w3, b3 = params
    B = x.shape[0]

    # Batch-on-lanes layout, batch padded to a lane-friendly tile.
    x_t = x.T                                              # (IN_DIM, B)
    tile = min(int(tile_m), max(128, ((B + 127) // 128) * 128))
    tile = ((tile + 127) // 128) * 128                     # multiple of 128
    b_pad = pl.cdiv(B, tile) * tile
    if b_pad != B:
        x_t = jnp.pad(x_t, ((0, 0), (0, b_pad - B)))
    grid = (b_pad // tile,)

    w2_bf16 = w2.astype(jnp.bfloat16)                      # MXU-native operand

    def rep(shape):
        # Constant operands: full tensor resident every step (block idx fixed).
        return pl.BlockSpec(shape, lambda i: (0, 0))

    cost = pl.CostEstimate(
        flops=2 * B * (IN_DIM * H1 + H1 * H2 + H2 * OUT_DIM),
        transcendentals=B * OUT_DIM,
        bytes_accessed=(x.size + B * OUT_DIM) * 4
        + w1.size * 4 + b1.size * 4 + w2.size * 2 + b2.size * 4
        + w3.size * 4 + b3.size * 4,
    )

    out_t = pl.pallas_call(
        mlp_kernel,
        out_shape=jax.ShapeDtypeStruct((OUT_DIM, b_pad), jnp.float32),
        grid_spec=pltpu.PrefetchScalarGridSpec(
            num_scalar_prefetch=0,
            grid=grid,
            in_specs=[
                pl.BlockSpec((IN_DIM, tile), lambda i: (0, i)),   # x (batch tile)
                rep((H1, IN_DIM)),      # w1
                rep((H1, 1)),           # b1
                rep((H2, H1)),          # w2 (bf16)
                rep((H2, 1)),           # b2
                rep((H2, OUT_DIM)),     # w3 (stored [in, out] -> column vector)
                rep((OUT_DIM, 1)),      # b3
            ],
            out_specs=pl.BlockSpec((OUT_DIM, tile), lambda i: (0, i)),
        ),
        compiler_params=pltpu.CompilerParams(
            dimension_semantics=("parallel",),
        ),
        cost_estimate=cost,
    )(x_t, w1, b1, w2_bf16, b2, w3, b3)

    return out_t[:, :B].T                                  # (B, OUT_DIM)


def init_params(key):
    """PyTorch-Linear-style init: U(-1/sqrt(fan_in), +1/sqrt(fan_in)).

    Storage layout (kernel-friendly, batch-on-lanes):
      w1: (H1, IN_DIM)   b1: (H1, 1)
      w2: (H2, H1)       b2: (H2, 1)
      w3: (H2, OUT_DIM)  b3: (OUT_DIM, 1)   # fc3 weight stored transposed
    """
    def linear(key, fan_in, fan_out):
        kw, kb = jax.random.split(key)
        bound = 1.0 / jnp.sqrt(fan_in)
        w = jax.random.uniform(kw, (fan_out, fan_in), jnp.float32, -bound, bound)
        b = jax.random.uniform(kb, (fan_out, 1), jnp.float32, -bound, bound)
        return w, b

    k1, k2, k3 = jax.random.split(key, 3)
    w1, b1 = linear(k1, IN_DIM, H1)
    w2, b2 = linear(k2, H1, H2)
    w3, b3 = linear(k3, H2, OUT_DIM)
    return (w1, b1, w2, b2, w3.T, b3)      # w3 stored as (H2, OUT_DIM)


def mlp_reference(x, params):
    w1, b1, w2, b2, w3, b3 = params
    h1 = jax.nn.relu(x @ w1.T + b1[:, 0])
    h2 = jax.nn.relu(h1 @ w2.T + b2[:, 0])
    return jax.nn.sigmoid(h2 @ w3 + b3[:, 0])


if __name__ == "__main__":
    key = jax.random.PRNGKey(0)
    kp, kx, kx2 = jax.random.split(key, 3)
    params = init_params(kp)

    # Small batch (single 128-lane tile, one grid step).
    B = 8
    x = jax.random.normal(kx, (B, IN_DIM), jnp.float32)
    out = jax.block_until_ready(mlp_forward(x, params))
    ref = mlp_reference(x, params)
    assert out.shape == (B, OUT_DIM)
    # fc2 uses bf16 inputs (f32 accumulation) -> tolerance relaxed vs f32 ref.
    assert jnp.allclose(out, ref, atol=2e-2, rtol=2e-2), float(
        jnp.max(jnp.abs(out - ref)))

    # Larger, non-multiple batch: exercises padding + multi-step parallel grid.
    B2 = 700
    x2 = jax.random.normal(kx2, (B2, IN_DIM), jnp.float32)
    out2 = jax.block_until_ready(mlp_forward(x2, params, tile_m=512))
    ref2 = mlp_reference(x2, params)
    assert out2.shape == (B2, OUT_DIM)
    assert jnp.allclose(out2, ref2, atol=2e-2, rtol=2e-2), float(
        jnp.max(jnp.abs(out2 - ref2)))

    print("KERNEL_OK")
</pallas_src>

<mosaic_0001>
module attributes {stable_mosaic.version = 11 : i64} {
  func.func @mlp_kernel(%arg0: i32, %arg1: memref<2x128xf32, #tpu.memory_space<vmem>>, %arg2: memref<512x2xf32, #tpu.memory_space<vmem>>, %arg3: memref<512x1xf32, #tpu.memory_space<vmem>>, %arg4: memref<128x512xbf16, #tpu.memory_space<vmem>>, %arg5: memref<128x1xf32, #tpu.memory_space<vmem>>, %arg6: memref<128x1xf32, #tpu.memory_space<vmem>>, %arg7: memref<1x1xf32, #tpu.memory_space<vmem>>, %arg8: memref<1x128xf32, #tpu.memory_space<vmem>>) attributes {dimension_semantics = [#tpu.dimension_semantics<parallel>], iteration_bounds = array<i64: 1>, scalar_prefetch = 0 : i64, scratch_operands = 0 : i64, tpu.core_type = #tpu.core_type<tc>, window_params = [{transform_indices = @transform_0, window_bounds = array<i64: 2, 128>}, {pipeline_mode = #tpu.pipeline_mode<synchronous>, transform_indices = @transform_1, window_bounds = array<i64: 512, 2>}, {pipeline_mode = #tpu.pipeline_mode<synchronous>, transform_indices = @transform_2, window_bounds = array<i64: 512, 1>}, {pipeline_mode = #tpu.pipeline_mode<synchronous>, transform_indices = @transform_3, window_bounds = array<i64: 128, 512>}, {pipeline_mode = #tpu.pipeline_mode<synchronous>, transform_indices = @transform_4, window_bounds = array<i64: 128, 1>}, {pipeline_mode = #tpu.pipeline_mode<synchronous>, transform_indices = @transform_5, window_bounds = array<i64: 128, 1>}, {pipeline_mode = #tpu.pipeline_mode<synchronous>, transform_indices = @transform_6, window_bounds = array<i64: 1, 1>}, {transform_indices = @transform_7, window_bounds = array<i64: 1, 128>}]} {
    %c0 = arith.constant 0 : index
    %c0_0 = arith.constant 0 : index
    %0 = vector.load %arg1[%c0, %c0_0] : memref<2x128xf32, #tpu.memory_space<vmem>>, vector<2x128xf32>
    %c0_1 = arith.constant 0 : index
    %c0_2 = arith.constant 0 : index
    %1 = vector.load %arg2[%c0_1, %c0_2] : memref<512x2xf32, #tpu.memory_space<vmem>>, vector<512x2xf32>
    %2 = vector.extract_strided_slice %1 {offsets = [0, 0], sizes = [512, 1], strides = [1, 1]} : vector<512x2xf32> to vector<512x1xf32>
    %3 = vector.extract_strided_slice %0 {offsets = [0, 0], sizes = [1, 128], strides = [1, 1]} : vector<2x128xf32> to vector<1x128xf32>
    %4 = vector.broadcast %2 : vector<512x1xf32> to vector<512x128xf32>
    %5 = vector.broadcast %3 : vector<1x128xf32> to vector<512x128xf32>
    %6 = arith.mulf %4, %5 : vector<512x128xf32>
    %7 = vector.extract_strided_slice %1 {offsets = [0, 1], sizes = [512, 1], strides = [1, 1]} : vector<512x2xf32> to vector<512x1xf32>
    %8 = vector.extract_strided_slice %0 {offsets = [1, 0], sizes = [1, 128], strides = [1, 1]} : vector<2x128xf32> to vector<1x128xf32>
    %9 = vector.broadcast %7 : vector<512x1xf32> to vector<512x128xf32>
    %10 = vector.broadcast %8 : vector<1x128xf32> to vector<512x128xf32>
    %11 = arith.mulf %9, %10 : vector<512x128xf32>
    %12 = arith.addf %6, %11 : vector<512x128xf32>
    %c0_3 = arith.constant 0 : index
    %c0_4 = arith.constant 0 : index
    %13 = vector.load %arg3[%c0_3, %c0_4] : memref<512x1xf32, #tpu.memory_space<vmem>>, vector<512x1xf32>
    %14 = vector.broadcast %13 : vector<512x1xf32> to vector<512x128xf32>
    %15 = arith.addf %12, %14 : vector<512x128xf32>
    %cst = arith.constant 0.000000e+00 : f32
    %16 = vector.broadcast %cst : f32 to vector<512x128xf32>
    %17 = arith.maximumf %15, %16 : vector<512x128xf32>
    %c0_5 = arith.constant 0 : index
    %c0_6 = arith.constant 0 : index
    %18 = vector.load %arg4[%c0_5, %c0_6] : memref<128x512xbf16, #tpu.memory_space<vmem>>, vector<128x512xbf16>
    %19 = arith.truncf %17 : vector<512x128xf32> to vector<512x128xbf16>
    %cst_7 = arith.constant dense<0.000000e+00> : vector<128x128xf32>
    %20 = tpu.matmul %18, %19, %cst_7 {dimension_numbers = #tpu.dot_dimension_numbers<[1], [0], [0], [1], [0, 0, 1, 1], [], []>} : vector<128x512xbf16>, vector<512x128xbf16>, vector<128x128xf32> -> vector<128x128xf32>
    %c0_8 = arith.constant 0 : index
    %c0_9 = arith.constant 0 : index
    %21 = vector.load %arg5[%c0_8, %c0_9] : memref<128x1xf32, #tpu.memory_space<vmem>>, vector<128x1xf32>
    %22 = vector.broadcast %21 : vector<128x1xf32> to vector<128x128xf32>
    %23 = arith.addf %20, %22 : vector<128x128xf32>
    %cst_10 = arith.constant 0.000000e+00 : f32
    %24 = vector.broadcast %cst_10 : f32 to vector<128x128xf32>
    %25 = arith.maximumf %23, %24 : vector<128x128xf32>
    %c0_11 = arith.constant 0 : index
    %c0_12 = arith.constant 0 : index
    %26 = vector.load %arg6[%c0_11, %c0_12] : memref<128x1xf32, #tpu.memory_space<vmem>>, vector<128x1xf32>
    %27 = vector.broadcast %26 : vector<128x1xf32> to vector<128x128xf32>
    %28 = arith.mulf %27, %25 : vector<128x128xf32>
    %cst_13 = arith.constant dense<0.000000e+00> : vector<128xf32>
    %29 = vector.multi_reduction <add>, %28, %cst_13 [0] : vector<128x128xf32> to vector<128xf32>
    %30 = vector.shape_cast %29 : vector<128xf32> to vector<1x128xf32>
    %c0_14 = arith.constant 0 : index
    %c0_15 = arith.constant 0 : index
    %31 = vector.load %arg7[%c0_14, %c0_15] : memref<1x1xf32, #tpu.memory_space<vmem>>, vector<1x1xf32>
    %32 = vector.broadcast %31 : vector<1x1xf32> to vector<1x128xf32>
    %33 = arith.addf %30, %32 : vector<1x128xf32>
    %34 = arith.negf %33 : vector<1x128xf32>
    %35 = math.exp %34 : vector<1x128xf32>
    %cst_16 = arith.constant 1.000000e+00 : f32
    %36 = vector.broadcast %cst_16 : f32 to vector<1x128xf32>
    %37 = arith.addf %36, %35 : vector<1x128xf32>
    %38 = arith.divf %36, %37 : vector<1x128xf32>
    %c0_17 = arith.constant 0 : index
    %c0_18 = arith.constant 0 : index
    %39 = vector.load %arg8[%c0_17, %c0_18] : memref<1x128xf32, #tpu.memory_space<vmem>>, vector<1x128xf32>
    tpu.vector_store %arg8[%c0_17, %c0_18], %38 {strides = array<i32>} : memref<1x128xf32, #tpu.memory_space<vmem>>, vector<1x128xf32>,
    return
  }
  func.func @transform_0(%arg0: i32) -> (i32, i32) {
    %c0_i32 = arith.constant 0 : i32
    %c0_i32_0 = arith.constant 0 : i32
    return %c0_i32, %arg0 : i32, i32
  }
  func.func @transform_1(%arg0: i32) -> (i32, i32) {
    %c0_i32 = arith.constant 0 : i32
    %c0_i32_0 = arith.constant 0 : i32
    %c0_i32_1 = arith.constant 0 : i32
    return %c0_i32, %c0_i32_0 : i32, i32
  }
  func.func @transform_2(%arg0: i32) -> (i32, i32) {
    %c0_i32 = arith.constant 0 : i32
    %c0_i32_0 = arith.constant 0 : i32
    %c0_i32_1 = arith.constant 0 : i32
    return %c0_i32, %c0_i32_0 : i32, i32
  }
  func.func @transform_3(%arg0: i32) -> (i32, i32) {
    %c0_i32 = arith.constant 0 : i32
    %c0_i32_0 = arith.constant 0 : i32
    %c0_i32_1 = arith.constant 0 : i32
    return %c0_i32, %c0_i32_0 : i32, i32
  }
  func.func @transform_4(%arg0: i32) -> (i32, i32) {
    %c0_i32 = arith.constant 0 : i32
    %c0_i32_0 = arith.constant 0 : i32
    %c0_i32_1 = arith.constant 0 : i32
    return %c0_i32, %c0_i32_0 : i32, i32
  }
  func.func @transform_5(%arg0: i32) -> (i32, i32) {
    %c0_i32 = arith.constant 0 : i32
    %c0_i32_0 = arith.constant 0 : i32
    %c0_i32_1 = arith.constant 0 : i32
    return %c0_i32, %c0_i32_0 : i32, i32
  }
  func.func @transform_6(%arg0: i32) -> (i32, i32) {
    %c0_i32 = arith.constant 0 : i32
    %c0_i32_0 = arith.constant 0 : i32
    %c0_i32_1 = arith.constant 0 : i32
    return %c0_i32, %c0_i32_0 : i32, i32
  }
  func.func @transform_7(%arg0: i32) -> (i32, i32) {
    %c0_i32 = arith.constant 0 : i32
    %c0_i32_0 = arith.constant 0 : i32
    return %c0_i32, %arg0 : i32, i32
  }
}

</mosaic_0001>

<bundles_post_ra>
// kernel: tpu_custom_call.1
= control target key start
LH: loop header
LB: loop body
LE: loop exit
PB: predicated region body
PF: predicated region fallthrough
CT: control target
= control target key end

     0   :  { %s3586_s0 = inlined_call_operand.vmem [shape: f32[2,128], index: 0, kind: input, shape index: {}]   ;;  %s3587_s1 = inlined_call_operand.vmem [shape: f32[512,2], index: 1, kind: input, shape index: {}]   ;;  %s3588_s2 = inlined_call_operand.vmem [shape: f32[512,1], index: 2, kind: input, shape index: {}]   ;;  %s3589_s3 = inlined_call_operand.vmem [shape: bf16[128,512], index: 3, kind: input, shape index: {}]   ;;  %s3590_s4 = inlined_call_operand.vmem [shape: f32[128,1], index: 4, kind: input, shape index: {}]   ;;  %s3591_s5 = inlined_call_operand.vmem [shape: f32[128,1], index: 5, kind: input, shape index: {}]   ;;  %s3592_s6 = inlined_call_operand.<no memory space> [shape: f32[1,1], index: 6, kind: input, shape index: {}]   ;;  %s3593_s7 = inlined_call_operand.hbm [shape: f32[1,128], index: 7, kind: output, shape index: {}]  }
   0x1   :  { %v12_v0 = vstv %s3592_s6 }
   0x2   :  { %13 = vst [vmem:[#allocation2] sm:$0x1] %v12_v0 }
   0x3   :  { %v2382_v1 = vld [vmem:[%s3587_s1 + $0x10] sm:$0xff]  ;;  %v2387_v2 = vld [vmem:[%s3587_s1] sm:$0xff]  ;;  %v3594_v3 = vmov 1   ;;  %v3596_v4 = vmov 0   ;;  %v34_v5 = vld [vmem:[%s3587_s1 + $0x18] sm:$0xff] }
   0x4   :  { %2243 = vset.pattern.permute.xlu0 %v3594_v3  ;;  %2242 = vset.pattern.permute.xlu1 %v3596_v4  ;;  %v36_v6 = vld [vmem:[%s3587_s1 + $0x28] sm:$0xff]  ;;  %v38_v7 = vld [vmem:[%s3587_s1 + $0x38] sm:$0xff] }
   0x5   :  { %107 = vperm.xlu1 %2242, %v2382_v1   ;;  %484 = vperm.xlu0 %2243, %v2387_v2   ;;  %v40_v8 = vld [vmem:[%s3587_s1 + $0x48] sm:$0xff]  ;;  %v42_v9 = vld [vmem:[%s3587_s1 + $0x58] sm:$0xff] }
   0x6   :  { %v44_v10 = vld [vmem:[%s3587_s1 + $0x68] sm:$0xff] }
   0x9   :  { %112 = vperm.xlu1 %2242, %v34_v5   ;;  %496 = vperm.xlu0 %2243, %v34_v5  }
   0xd   :  { %122 = vperm.xlu1 %2242, %v36_v6   ;;  %504 = vperm.xlu0 %2243, %v36_v6  }
  0x11   :  { %132 = vperm.xlu1 %2242, %v38_v7   ;;  %512 = vperm.xlu0 %2243, %v38_v7  }
  0x15   :  { %142 = vperm.xlu1 %2242, %v40_v8   ;;  %520 = vperm.xlu0 %2243, %v40_v8  }
  0x19   :  { %152 = vperm.xlu1 %2242, %v42_v9   ;;  %528 = vperm.xlu0 %2243, %v42_v9  }
  0x1a   :  { %14 = vsyncpa [#allocation4], 0  ;;  %v46_v11 = vld [vmem:[%s3587_s1 + $0x78] sm:$0xff]  ;;  %v48_v12 = vld [vmem:[%s3587_s1 + $0x88] sm:$0xff] }
  0x1b   :  { %v50_v13 = vld [vmem:[%s3587_s1 + $0x98] sm:$0xff]  ;;  %v52_v14 = vld [vmem:[%s3587_s1 + $0xa8] sm:$0xff]  ;;  %v2479_v32 = vld [vmem:[%s3587_s1 + $0x1c0] sm:$0xff] }
  0x1c   :  { %v54_v15 = vld [vmem:[%s3587_s1 + $0xb8] sm:$0xff]  ;;  %v56_v16 = vld [vmem:[%s3587_s1 + $0xc8] sm:$0xff]  ;;  %v2491_v34 = vld [vmem:[%s3587_s1 + $0x1d0] sm:$0xff] }
  0x1d   :  { %162 = vperm.xlu1 %2242, %v44_v10   ;;  %536 = vperm.xlu0 %2243, %v44_v10   ;;  %v58_v17 = vld [vmem:[%s3587_s1 + $0xd8] sm:$0xff]  ;;  %v60_v18 = vld [vmem:[%s3587_s1 + $0xe8] sm:$0xff]  ;;  %v2503_v36 = vld [vmem:[%s3587_s1 + $0x1e0] sm:$0xff] }
  0x1e   :  { %v62_v19 = vld [vmem:[%s3587_s1 + $0xf8] sm:$0xff]  ;;  %v64_v20 = vld [vmem:[%s3587_s1 + $0x108] sm:$0xff]  ;;  %v2515_v38 = vld [vmem:[%s3587_s1 + $0x1f0] sm:$0xff] }
  0x1f   :  { %v66_v21 = vld [vmem:[%s3587_s1 + $0x118] sm:$0xff]  ;;  %v68_v22 = vld [vmem:[%s3587_s1 + $0x128] sm:$0xff]  ;;  %v35_v43 = vld [vmem:[%s3587_s1 + $0x20] sm:$0xff] }
  0x20   :  { %v70_v23 = vld [vmem:[%s3587_s1 + $0x138] sm:$0xff]  ;;  %v72_v24 = vld [vmem:[%s3587_s1 + $0x148] sm:$0xff]  ;;  %v37_v46 = vld [vmem:[%s3587_s1 + $0x30] sm:$0xff] }
  0x21   :  { %172 = vperm.xlu1 %2242, %v46_v11   ;;  %544 = vperm.xlu0 %2243, %v46_v11   ;;  %v74_v25 = vld [vmem:[%s3587_s1 + $0x158] sm:$0xff]  ;;  %v76_v26 = vld [vmem:[%s3587_s1 + $0x168] sm:$0xff]  ;;  %v39_v49 = vld [vmem:[%s3587_s1 + $0x40] sm:$0xff] }
  0x22   :  { %v78_v27 = vld [vmem:[%s3587_s1 + $0x178] sm:$0xff]  ;;  %v80_v28 = vld [vmem:[%s3587_s1 + $0x188] sm:$0xff]  ;;  %v41_v52 = vld [vmem:[%s3587_s1 + $0x50] sm:$0xff] }
  0x23   :  { %v82_v29 = vld [vmem:[%s3587_s1 + $0x198] sm:$0xff]  ;;  %v84_v30 = vld [vmem:[%s3587_s1 + $0x1a8] sm:$0xff]  ;;  %v43_v55 = vld [vmem:[%s3587_s1 + $0x60] sm:$0xff] }
  0x24   :  { %v2474_v31 = vld [vmem:[%s3587_s1 + $0x1b8] sm:$0xff]  ;;  %v2486_v33 = vld [vmem:[%s3587_s1 + $0x1c8] sm:$0xff]  ;;  %v45_v58 = vld [vmem:[%s3587_s1 + $0x70] sm:$0xff] }
  0x25   :  { %182 = vperm.xlu1 %2242, %v48_v12   ;;  %552 = vperm.xlu0 %2243, %v48_v12   ;;  %v2498_v35 = vld [vmem:[%s3587_s1 + $0x1d8] sm:$0xff]  ;;  %v2510_v37 = vld [vmem:[%s3587_s1 + $0x1e8] sm:$0xff]  ;;  %v47_v61 = vld [vmem:[%s3587_s1 + $0x80] sm:$0xff] }
  0x26   :  { %v2522_v39 = vld [vmem:[%s3587_s1 + $0x1f8] sm:$0xff]  ;;  %v32_v40 = vld [vmem:[%s3587_s1 + $0x8] sm:$0xff]  ;;  %v49_v0 = vld [vmem:[%s3587_s1 + $0x90] sm:$0xff] }
  0x27   :  { %v51_v5 = vld [vmem:[%s3587_s1 + $0xa0] sm:$0xff]  ;;  %v53_v8 = vld [vmem:[%s3587_s1 + $0xb0] sm:$0xff] }
  0x28   :  { %v55_v11 = vld [vmem:[%s3587_s1 + $0xc0] sm:$0xff] }
  0x29   :  { %192 = vperm.xlu1 %2242, %v50_v13   ;;  %560 = vperm.xlu0 %2243, %v50_v13  }
  0x2d   :  { %202 = vperm.xlu1 %2242, %v52_v14   ;;  %568 = vperm.xlu0 %2243, %v52_v14   ;;  %v57_v14 = vld [vmem:[%s3587_s1 + $0xd0] sm:$0xff] }
  0x31   :  { %212 = vperm.xlu1 %2242, %v54_v15   ;;  %576 = vperm.xlu0 %2243, %v54_v15  }
  0x35   :  { %222 = vperm.xlu1 %2242, %v56_v16   ;;  %584 = vperm.xlu0 %2243, %v56_v16  }
  0x39   :  { %232 = vperm.xlu1 %2242, %v58_v17   ;;  %592 = vperm.xlu0 %2243, %v58_v17   ;;  %v59_v17 = vld [vmem:[%s3587_s1 + $0xe0] sm:$0xff] }
  0x3d   :  { %242 = vperm.xlu1 %2242, %v60_v18   ;;  %600 = vperm.xlu0 %2243, %v60_v18  }
  0x41   :  { %252 = vperm.xlu1 %2242, %v62_v19   ;;  %608 = vperm.xlu0 %2243, %v62_v19  }
  0x45   :  { %262 = vperm.xlu1 %2242, %v64_v20   ;;  %616 = vperm.xlu0 %2243, %v64_v20   ;;  %v61_v20 = vld [vmem:[%s3587_s1 + $0xf0] sm:$0xff] }
  0x49   :  { %272 = vperm.xlu1 %2242, %v66_v21   ;;  %624 = vperm.xlu0 %2243, %v66_v21  }
  0x4d   :  { %282 = vperm.xlu1 %2242, %v68_v22   ;;  %632 = vperm.xlu0 %2243, %v68_v22  }
  0x51   :  { %292 = vperm.xlu1 %2242, %v70_v23   ;;  %640 = vperm.xlu0 %2243, %v70_v23   ;;  %v63_v23 = vld [vmem:[%s3587_s1 + $0x100] sm:$0xff] }
  0x55   :  { %302 = vperm.xlu1 %2242, %v72_v24   ;;  %648 = vperm.xlu0 %2243, %v72_v24  }
  0x59   :  { %312 = vperm.xlu1 %2242, %v74_v25   ;;  %656 = vperm.xlu0 %2243, %v74_v25  }
  0x5d   :  { %322 = vperm.xlu1 %2242, %v76_v26   ;;  %664 = vperm.xlu0 %2243, %v76_v26   ;;  %v65_v26 = vld [vmem:[%s3587_s1 + $0x110] sm:$0xff] }
  0x61   :  { %332 = vperm.xlu1 %2242, %v78_v27   ;;  %672 = vperm.xlu0 %2243, %v78_v27  }
  0x65   :  { %342 = vperm.xlu1 %2242, %v80_v28   ;;  %680 = vperm.xlu0 %2243, %v80_v28  }
  0x69   :  { %352 = vperm.xlu1 %2242, %v82_v29   ;;  %688 = vperm.xlu0 %2243, %v82_v29   ;;  %v67_v29 = vld [vmem:[%s3587_s1 + $0x120] sm:$0xff] }
  0x6d   :  { %362 = vperm.xlu1 %2242, %v84_v30   ;;  %696 = vperm.xlu0 %2243, %v84_v30  }
  0x71   :  { %372 = vperm.xlu1 %2242, %v2474_v31   ;;  %708 = vperm.xlu0 %2243, %v2479_v32  }
  0x75   :  { %382 = vperm.xlu1 %2242, %v2486_v33   ;;  %716 = vperm.xlu0 %2243, %v2491_v34  }
  0x79   :  { %392 = vperm.xlu1 %2242, %v2498_v35   ;;  %724 = vperm.xlu0 %2243, %v2503_v36  }
  0x7d   :  { %402 = vperm.xlu1 %2242, %v2510_v37   ;;  %732 = vperm.xlu0 %2243, %v2515_v38  }
  0x81   :  { %412 = vperm.xlu1 %2242, %v2522_v39   ;;  %2254 = vset.pattern.permute.xlu0 %v3596_v4 }
  0x82   :  { %97 = vperm.xlu0 %2254, %v2387_v2  }
  0x84   :  { %v2530_v41 = vpop.permute.xlu1 %107  ;;  %v2532_v42 = vpop.permute.xlu0 %484 }
  0x85   :  { %2244 = vset.pattern.permute.xlu1 %v3594_v3 }
  0x86   :  { %488 = vperm.xlu1 %2244, %v32_v40   ;;  %102 = vperm.xlu0 %2254, %v32_v40  }
  0x88   :  { %v2538_v44 = vpop.permute.xlu1 %112  ;;  %v2540_v45 = vpop.permute.xlu0 %496 }
  0x8a   :  { %492 = vperm.xlu1 %2244, %v2382_v1   ;;  %117 = vperm.xlu0 %2254, %v35_v43  }
  0x8c   :  { %v2546_v47 = vpop.permute.xlu1 %122  ;;  %v2548_v48 = vpop.permute.xlu0 %504 }
  0x8e   :  { %500 = vperm.xlu1 %2244, %v35_v43   ;;  %127 = vperm.xlu0 %2254, %v37_v46   ;;  %v69_v43 = vld [vmem:[%s3587_s1 + $0x130] sm:$0xff] }
  0x90   :  { %v2553_v50 = vpop.permute.xlu1 %132  ;;  %v2555_v51 = vpop.permute.xlu0 %512 }
  0x91   :  { %3600 = vst [vmem:[#allocation6_spill] sm:$0xff] %v2553_v50  ;;  %3601 = vst [vmem:[#allocation7_spill] sm:$0xff] %v2555_v51 }
  0x92   :  { %508 = vperm.xlu1 %2244, %v37_v46   ;;  %137 = vperm.xlu0 %2254, %v39_v49  }
  0x94   :  { %v2560_v53 = vpop.permute.xlu1 %142  ;;  %v2562_v54 = vpop.permute.xlu0 %520 }
  0x95   :  { %3602 = vst [vmem:[#allocation8_spill] sm:$0xff] %v2560_v53  ;;  %3603 = vst [vmem:[#allocation9_spill] sm:$0xff] %v2562_v54 }
  0x96   :  { %516 = vperm.xlu1 %2244, %v39_v49   ;;  %147 = vperm.xlu0 %2254, %v41_v52  }
  0x98   :  { %v2567_v56 = vpop.permute.xlu1 %152  ;;  %v2569_v57 = vpop.permute.xlu0 %528 }
  0x99   :  { %3604 = vst [vmem:[#allocation10_spill] sm:$0xff] %v2567_v56  ;;  %3605 = vst [vmem:[#allocation11_spill] sm:$0xff] %v2569_v57  ;;  %v922_v57 = vld [vmem:[%s3588_s2 + $0x198] sm:$0xff] }
  0x9a   :  { %524 = vperm.xlu1 %2244, %v41_v52   ;;  %157 = vperm.xlu0 %2254, %v43_v55   ;;  %v71_v52 = vld [vmem:[%s3587_s1 + $0x140] sm:$0xff] }
  0x9c   :  { %v2574_v59 = vpop.permute.xlu1 %162  ;;  %v2576_v60 = vpop.permute.xlu0 %536 }
  0x9d   :  { %3606 = vst [vmem:[#allocation12_spill] sm:$0xff] %v2574_v59  ;;  %3607 = vst [vmem:[#allocation13_spill] sm:$0xff] %v2576_v60 }
  0x9e   :  { %532 = vperm.xlu1 %2244, %v43_v55   ;;  %167 = vperm.xlu0 %2254, %v45_v58  }
  0xa0   :  { %v2581_v62 = vpop.permute.xlu1 %172  ;;  %v2583_v63 = vpop.permute.xlu0 %544 }
  0xa1   :  { %3608 = vst [vmem:[#allocation14_spill] sm:$0xff] %v2581_v62  ;;  %3609 = vst [vmem:[#allocation15_spill] sm:$0xff] %v2583_v63 }
  0xa2   :  { %540 = vperm.xlu1 %2244, %v45_v58   ;;  %177 = vperm.xlu0 %2254, %v47_v61  }
  0xa4   :  { %v2588_v1 = vpop.permute.xlu1 %182  ;;  %v2590_v2 = vpop.permute.xlu0 %552 }
  0xa6   :  { %548 = vperm.xlu1 %2244, %v47_v61   ;;  %187 = vperm.xlu0 %2254, %v49_v0   ;;  %v73_v61 = vld [vmem:[%s3587_s1 + $0x150] sm:$0xff] }
  0xa8   :  { %v2595_v6 = vpop.permute.xlu1 %192  ;;  %v2597_v7 = vpop.permute.xlu0 %560 }
  0xaa   :  { %556 = vperm.xlu1 %2244, %v49_v0   ;;  %197 = vperm.xlu0 %2254, %v51_v5  }
  0xac   :  { %v2602_v9 = vpop.permute.xlu1 %202  ;;  %v2604_v10 = vpop.permute.xlu0 %568 }
  0xae   :  { %564 = vperm.xlu1 %2244, %v51_v5   ;;  %207 = vperm.xlu0 %2254, %v53_v8  }
  0xb0   :  { %v2609_v12 = vpop.permute.xlu1 %212  ;;  %v2611_v13 = vpop.permute.xlu0 %576 }
  0xb1   :  { %3610 = vst [vmem:[#allocation16_spill] sm:$0xff] %v2609_v12  ;;  %3611 = vst [vmem:[#allocation17_spill] sm:$0xff] %v2611_v13 }
  0xb2   :  { %572 = vperm.xlu1 %2244, %v53_v8   ;;  %217 = vperm.xlu0 %2254, %v55_v11   ;;  %v75_v8 = vld [vmem:[%s3587_s1 + $0x160] sm:$0xff] }
  0xb4   :  { %v2616_v15 = vpop.permute.xlu1 %222  ;;  %v2618_v16 = vpop.permute.xlu0 %584 }
  0xb5   :  { %3612 = vst [vmem:[#allocation18_spill] sm:$0xff] %v2616_v15  ;;  %3613 = vst [vmem:[#allocation19_spill] sm:$0xff] %v2618_v16  ;;  %v881_v15 = vld [vmem:[%s3588_s2 + $0x50] sm:$0xff] }
  0xb6   :  { %580 = vperm.xlu1 %2244, %v55_v11   ;;  %227 = vperm.xlu0 %2254, %v57_v14  }
  0xb8   :  { %v2623_v18 = vpop.permute.xlu1 %232  ;;  %v2625_v19 = vpop.permute.xlu0 %592 }
  0xb9   :  { %3614 = vst [vmem:[#allocation20_spill] sm:$0xff] %v2623_v18  ;;  %3615 = vst [vmem:[#allocation21_spill] sm:$0xff] %v2625_v19  ;;  %v3649_v19 = vmov 1   ;;  %v892_v18 = vld [vmem:[%s3588_s2 + $0xa8] sm:$0xff] }
  0xba   :  { %588 = vperm.xlu1 %2244, %v57_v14   ;;  %237 = vperm.xlu0 %2254, %v59_v17  }
  0xbc   :  { %v2630_v21 = vpop.permute.xlu1 %242  ;;  %v2632_v22 = vpop.permute.xlu0 %600 }
  0xbd   :  { %3616 = vst [vmem:[#allocation22_spill] sm:$0xff] %v2630_v21  ;;  %3617 = vst [vmem:[#allocation23_spill] sm:$0xff] %v2632_v22  ;;  %v904_v22 = vld [vmem:[%s3588_s2 + $0x108] sm:$0xff] }
  0xbe   :  { %596 = vperm.xlu1 %2244, %v59_v17   ;;  %247 = vperm.xlu0 %2254, %v61_v20   ;;  %v77_v17 = vld [vmem:[%s3587_s1 + $0x170] sm:$0xff] }
  0xc0   :  { %v2637_v24 = vpop.permute.xlu1 %252  ;;  %v2639_v25 = vpop.permute.xlu0 %608 }
  0xc1   :  { %3618 = vst [vmem:[#allocation24_spill] sm:$0xff] %v2637_v24  ;;  %3619 = vst [vmem:[#allocation25_spill] sm:$0xff] %v2639_v25  ;;  %v888_v24 = vld [vmem:[%s3588_s2 + $0x88] sm:$0xff] }
  0xc2   :  { %604 = vperm.xlu1 %2244, %v61_v20   ;;  %257 = vperm.xlu0 %2254, %v63_v23  }
  0xc4   :  { %v2644_v27 = vpop.permute.xlu1 %262  ;;  %v2646_v28 = vpop.permute.xlu0 %616 }
  0xc6   :  { %612 = vperm.xlu1 %2244, %v63_v23   ;;  %267 = vperm.xlu0 %2254, %v65_v26  }
  0xc8   :  { %v2651_v30 = vpop.permute.xlu1 %272  ;;  %v2653_v40 = vpop.permute.xlu0 %624 }
  0xca   :  { %620 = vperm.xlu1 %2244, %v65_v26   ;;  %277 = vperm.xlu0 %2254, %v67_v29   ;;  %v79_v26 = vld [vmem:[%s3587_s1 + $0x180] sm:$0xff] }
  0xcc   :  { %v2658_v46 = vpop.permute.xlu1 %282  ;;  %v2660_v49 = vpop.permute.xlu0 %632 }
  0xce   :  { %628 = vperm.xlu1 %2244, %v67_v29   ;;  %287 = vperm.xlu0 %2254, %v69_v43  }
  0xd0   :  { %v2665_v55 = vpop.permute.xlu1 %292  ;;  %v2667_v58 = vpop.permute.xlu0 %640 }
  0xd1   :  { %3620 = vst [vmem:[#allocation26_spill] sm:$0xff] %v2665_v55  ;;  %3621 = vst [vmem:[#allocation27_spill] sm:$0xff] %v2667_v58 }
  0xd2   :  { %636 = vperm.xlu1 %2244, %v69_v43   ;;  %297 = vperm.xlu0 %2254, %v71_v52  }
  0xd4   :  { %v2672_v0 = vpop.permute.xlu1 %302  ;;  %v2674_v5 = vpop.permute.xlu0 %648 }
  0xd5   :  { %3622 = vst [vmem:[#allocation28_spill] sm:$0xff] %v2672_v0  ;;  %3623 = vst [vmem:[#allocation29_spill] sm:$0xff] %v2674_v5 }
  0xd6   :  { %644 = vperm.xlu1 %2244, %v71_v52   ;;  %307 = vperm.xlu0 %2254, %v73_v61   ;;  %v81_v52 = vld [vmem:[%s3587_s1 + $0x190] sm:$0xff] }
  0xd8   :  { %v2679_v11 = vpop.permute.xlu1 %312  ;;  %v2681_v14 = vpop.permute.xlu0 %656 }
  0xd9   :  { %3624 = vst [vmem:[#allocation30_spill] sm:$0xff] %v2679_v11  ;;  %3625 = vst [vmem:[#allocation31_spill] sm:$0xff] %v2681_v14  ;;  %v890_v14 = vld [vmem:[%s3588_s2 + $0x98] sm:$0xff] }
  0xda   :  { %652 = vperm.xlu1 %2244, %v73_v61   ;;  %317 = vperm.xlu0 %2254, %v75_v8  }
  0xdc   :  { %v2686_v20 = vpop.permute.xlu1 %322  ;;  %v2688_v23 = vpop.permute.xlu0 %664 }
  0xdd   :  { %3626 = vst [vmem:[#allocation32_spill] sm:$0xff] %v2686_v20  ;;  %3627 = vst [vmem:[#allocation33_spill] sm:$0xff] %v2688_v23  ;;  %v3634_v23 = vmov 0  }
  0xde   :  { %660 = vperm.xlu1 %2244, %v75_v8   ;;  %327 = vperm.xlu0 %2254, %v77_v17   ;;  %v83_v8 = vld [vmem:[%s3587_s1 + $0x1a0] sm:$0xff] }
  0xe0   :  { %v2693_v29 = vpop.permute.xlu1 %332  ;;  %v2695_v43 = vpop.permute.xlu0 %672 }
  0xe1   :  { %3628 = vst [vmem:[#allocation34_spill] sm:$0xff] %v2693_v29  ;;  %3629 = vst [vmem:[#allocation35_spill] sm:$0xff] %v2695_v43 }
  0xe2   :  { %668 = vperm.xlu1 %2244, %v77_v17   ;;  %337 = vperm.xlu0 %2254, %v79_v26   ;;  %v85_v17 = vld [vmem:[%s3587_s1 + $0x1b0] sm:$0xff] }
  0xe4   :  { %v2700_v61 = vpop.permute.xlu1 %342  ;;  %v2702_v3 = vpop.permute.xlu0 %680 }
  0xe6   :  { %676 = vperm.xlu1 %2244, %v79_v26   ;;  %347 = vperm.xlu0 %2254, %v81_v52  }
  0xe8   :  { %v2707_v4 = vpop.permute.xlu1 %352  ;;  %v2709_v29 = vpop.permute.xlu0 %688 }
  0xea   :  { %684 = vperm.xlu1 %2244, %v81_v52   ;;  %357 = vperm.xlu0 %2254, %v83_v8  }
  0xec   :  { %v2714_v43 = vpop.permute.xlu1 %362  ;;  %v2716_v63 = vpop.permute.xlu0 %696 }
  0xee   :  { %692 = vperm.xlu1 %2244, %v83_v8   ;;  %367 = vperm.xlu0 %2254, %v85_v17  }
  0xf0   :  { %v2718_v26 = vpop.permute.xlu1 %372  ;;  %v2720_v62 = vpop.permute.xlu0 %708 }
  0xf1   :  { %3630 = vst [vmem:[#allocation36_spill] sm:$0xff] %v2718_v26  ;;  %3631 = vst [vmem:[#allocation37_spill] sm:$0xff] %v2720_v62 }
  0xf2   :  { %700 = vperm.xlu1 %2244, %v85_v17   ;;  %377 = vperm.xlu0 %2254, %v2479_v32   ;;  %v871_v32 = vld [vmem:[%s3588_s2] sm:$0xff] }
  0xf4   :  { %v2723_v25 = vpop.permute.xlu1 %382  ;;  %v2725_v52 = vpop.permute.xlu0 %716 }
  0xf5   :  { %3632 = vst [vmem:[#allocation38_spill] sm:$0xff] %v2723_v25  ;;  %3633 = vst [vmem:[#allocation39_spill] sm:$0xff] %v2725_v52  ;;  %v874_v52 = vld [vmem:[%s3588_s2 + $0x18] sm:$0xff] }
  0xf6   :  { %2245 = vset.pattern.permute.xlu1 %v3634_v23  ;;  %387 = vperm.xlu0 %2254, %v2491_v34   ;;  %v919_v34 = vld [vmem:[%s3588_s2 + $0x180] sm:$0xff] }
  0xf7   :  { %1022 = vperm.xlu1 %2245, %v888_v24   ;;  %v887_v24 = vld [vmem:[%s3588_s2 + $0x80] sm:$0xff] }
  0xf8   :  { %v2732_v8 = vpop.permute.xlu1 %392  ;;  %v2734_v20 = vpop.permute.xlu0 %724 }
  0xf9   :  { %3635 = vst [vmem:[#allocation40_spill] sm:$0xff] %v2732_v8  ;;  %3636 = vst [vmem:[#allocation41_spill] sm:$0xff] %v2734_v20 }
  0xfa   :  { %397 = vperm.xlu0 %2254, %v2503_v36   ;;  %v903_v36 = vld [vmem:[%s3588_s2 + $0x100] sm:$0xff] }
  0xfb   :  { %937 = vperm.xlu1 %2245, %v871_v32  }
  0xfc   :  { %v2740_v17 = vpop.permute.xlu1 %402  ;;  %v2742_v60 = vpop.permute.xlu0 %732 }
  0xfd   :  { %3637 = vst [vmem:[#allocation42_spill] sm:$0xff] %v2740_v17  ;;  %3638 = vst [vmem:[#allocation43_spill] sm:$0xff] %v2742_v60  ;;  %v872_v60 = vld [vmem:[%s3588_s2 + $0x8] sm:$0xff] }
  0xfe   :  { %407 = vperm.xlu0 %2254, %v2515_v38   ;;  %v889_v38 = vld [vmem:[%s3588_s2 + $0x90] sm:$0xff] }
  0xff   :  { %1177 = vperm.xlu1 %2245, %v919_v34  }
 0x100   :  { %v2751_v20 = vpop.permute.xlu1 %412 }
 0x101   :  { %3639 = vst [vmem:[#allocation44_spill] sm:$0xff] %v2751_v20  ;;  %v2756_v32 = vpop.permute.xlu0 %97  ;;  %v920_v20 = vld [vmem:[%s3588_s2 + $0x188] sm:$0xff] }
 0x102   :  { %1017 = vperm.xlu0 %2254, %v887_v24   ;;  %v873_v24 = vld [vmem:[%s3588_s2 + $0x10] sm:$0xff] }
 0x103   :  { %1097 = vperm.xlu1 %2245, %v903_v36  }
 0x105   :  { %v2764_v34 = vpop.permute.xlu1 %488  ;;  %v2766_v17 = vpop.permute.xlu0 %102 }
 0x106   :  { %942 = vperm.xlu0 %2254, %v872_v60   ;;  %v921_v60 = vld [vmem:[%s3588_s2 + $0x190] sm:$0xff] }
 0x107   :  { %1027 = vperm.xlu1 %2245, %v889_v38  }
 0x109   :  { %v2774_v36 = vpop.permute.xlu1 %492  ;;  %v2776_v59 = vpop.permute.xlu0 %117 }
 0x10a   :  { %1182 = vperm.xlu0 %2254, %v920_v20   ;;  %v905_v20 = vld [vmem:[%s3588_s2 + $0x110] sm:$0xff] }
 0x10b   :  { %947 = vperm.xlu1 %2245, %v873_v24  }
 0x10d   :  { %v2784_v38 = vpop.permute.xlu1 %500  ;;  %v2786_v21 = vpop.permute.xlu0 %127 }
 0x10e   :  { %3640 = vst [vmem:[#allocation45_spill] sm:$0xff] %v2786_v21  ;;  %1102 = vperm.xlu0 %2254, %v904_v22   ;;  %v891_v22 = vld [vmem:[%s3588_s2 + $0xa0] sm:$0xff]  ;;  %v913_v21 = vld [vmem:[%s3588_s2 + $0x150] sm:$0xff] }
 0x10f   :  { %1187 = vperm.xlu1 %2245, %v921_v60  }
 0x111   :  { %v2794_v24 = vpop.permute.xlu1 %508  ;;  %v2796_v11 = vpop.permute.xlu0 %137 }
 0x112   :  { %3641 = vst [vmem:[#allocation46_spill] sm:$0xff] %v2794_v24  ;;  %3642 = vst [vmem:[#allocation47_spill] sm:$0xff] %v2796_v11  ;;  %1032 = vperm.xlu0 %2254, %v890_v14   ;;  %v875_v14 = vld [vmem:[%s3588_s2 + $0x20] sm:$0xff] }
 0x113   :  { %1107 = vperm.xlu1 %2245, %v905_v20  }
 0x115   :  { %v2804_v60 = vpop.permute.xlu1 %516  ;;  %v2806_v8 = vpop.permute.xlu0 %147 }
 0x116   :  { %3643 = vst [vmem:[#allocation48_spill] sm:$0xff] %v2804_v60  ;;  %3644 = vst [vmem:[#allocation49_spill] sm:$0xff] %v2806_v8  ;;  %952 = vperm.xlu0 %2254, %v874_v52   ;;  %v906_v8 = vld [vmem:[%s3588_s2 + $0x118] sm:$0xff] }
 0x117   :  { %1037 = vperm.xlu1 %2245, %v891_v22  }
 0x119   :  { %v2814_v20 = vpop.permute.xlu1 %524  ;;  %v2816_v56 = vpop.permute.xlu0 %157 }
 0x11a   :  { %3645 = vst [vmem:[#allocation50_spill] sm:$0xff] %v2814_v20  ;;  %3646 = vst [vmem:[#allocation51_spill] sm:$0xff] %v2816_v56  ;;  %1192 = vperm.xlu0 %2254, %v922_v57  }
 0x11b   :  { %957 = vperm.xlu1 %2245, %v875_v14   ;;  %v924_v14 = vld [vmem:[%s3588_s2 + $0x1a8] sm:$0xff] }
 0x11d   :  { %v2821_v52 = vpop.permute.xlu1 %532  ;;  %v2823_v22 = vpop.permute.xlu0 %167 }
 0x11e   :  { %3647 = vst [vmem:[#allocation52_spill] sm:$0xff] %v2821_v52  ;;  %3648 = vst [vmem:[#allocation53_spill] sm:$0xff] %v2823_v22  ;;  %1112 = vperm.xlu0 %2254, %v906_v8   ;;  %v876_v8 = vld [vmem:[%s3588_s2 + $0x28] sm:$0xff] }
 0x11f   :  { %2246 = vset.pattern.permute.xlu1 %v3649_v19 }
 0x120   :  { %704 = vperm.xlu1 %2246, %v2474_v31   ;;  %v908_v31 = vld [vmem:[%s3588_s2 + $0x128] sm:$0xff] }
 0x121   :  { %v2830_v56 = vpop.permute.xlu1 %540  ;;  %v2832_v57 = vpop.permute.xlu0 %177 }
 0x122   :  { %3650 = vst [vmem:[#allocation54_spill] sm:$0xff] %v2830_v56  ;;  %1042 = vperm.xlu0 %2254, %v892_v18   ;;  %v923_v18 = vld [vmem:[%s3588_s2 + $0x1a0] sm:$0xff] }
 0x124   :  { %2247 = vset.pattern.permute.xlu1 %v3634_v23 }
 0x125   :  { %1202 = vperm.xlu1 %2247, %v924_v14   ;;  %v2841_v22 = vpop.permute.xlu1 %548  ;;  %v2843_v52 = vpop.permute.xlu0 %187  ;;  %v894_v14 = vld [vmem:[%s3588_s2 + $0xb8] sm:$0xff] }
 0x126   :  { %962 = vperm.xlu0 %2254, %v876_v8   ;;  %v907_v8 = vld [vmem:[%s3588_s2 + $0x120] sm:$0xff] }
 0x129   :  { %1122 = vperm.xlu1 %2247, %v908_v31   ;;  %v2851_v56 = vpop.permute.xlu1 %556  ;;  %v2853_v20 = vpop.permute.xlu0 %197  ;;  %v878_v31 = vld [vmem:[%s3588_s2 + $0x38] sm:$0xff] }
 0x12a   :  { %1197 = vperm.xlu0 %2254, %v923_v18   ;;  %v893_v18 = vld [vmem:[%s3588_s2 + $0xb0] sm:$0xff] }
 0x12d   :  { %1052 = vperm.xlu1 %2247, %v894_v14   ;;  %v2861_v5 = vpop.permute.xlu1 %564  ;;  %v2863_v0 = vpop.permute.xlu0 %207  ;;  %v877_v14 = vld [vmem:[%s3588_s2 + $0x30] sm:$0xff] }
 0x12e   :  { %3651 = vst [vmem:[#allocation55_spill] sm:$0xff] %v2863_v0  ;;  %1117 = vperm.xlu0 %2254, %v907_v8  }
 0x131   :  { %972 = vperm.xlu1 %2247, %v878_v31   ;;  %v2871_v62 = vpop.permute.xlu1 %572  ;;  %v2873_v25 = vpop.permute.xlu0 %217  ;;  %v926_v31 = vld [vmem:[%s3588_s2 + $0x1b8] sm:$0xff] }
 0x132   :  { %3652 = vst [vmem:[#allocation56_spill] sm:$0xff] %v2871_v62  ;;  %3653 = vst [vmem:[#allocation57_spill] sm:$0xff] %v2873_v25  ;;  %1047 = vperm.xlu0 %2254, %v893_v18   ;;  %v925_v18 = vld [vmem:[%s3588_s2 + $0x1b0] sm:$0xff] }
 0x135   :  { %2248 = vset.pattern.permute.xlu1 %v3649_v19  ;;  %v2879_v8 = vpop.permute.xlu1 %580  ;;  %v2881_v54 = vpop.permute.xlu0 %227 }
 0x136   :  { %3654 = vst [vmem:[#allocation58_spill] sm:$0xff] %v2879_v8  ;;  %3655 = vst [vmem:[#allocation59_spill] sm:$0xff] %v2881_v54  ;;  %712 = vperm.xlu1 %2248, %v2486_v33   ;;  %967 = vperm.xlu0 %2254, %v877_v14   ;;  %v895_v33 = vld [vmem:[%s3588_s2 + $0xc0] sm:$0xff]  ;;  %v909_v14 = vld [vmem:[%s3588_s2 + $0x130] sm:$0xff] }
 0x137   :  { %v930_v8 = vld [vmem:[%s3588_s2 + $0x1d8] sm:$0xff] }
 0x139   :  { %v2890_v53 = vpop.permute.xlu1 %588  ;;  %v2892_v60 = vpop.permute.xlu0 %237 }
 0x13a   :  { %3656 = vst [vmem:[#allocation60_spill] sm:$0xff] %v2890_v53  ;;  %3657 = vst [vmem:[#allocation61_spill] sm:$0xff] %v2892_v60  ;;  %2249 = vset.pattern.permute.xlu1 %v3634_v23  ;;  %1212 = vperm.xlu0 %2254, %v926_v31   ;;  %v879_v60 = vld [vmem:[%s3588_s2 + $0x40] sm:$0xff]  ;;  %v910_v31 = vld [vmem:[%s3588_s2 + $0x138] sm:$0xff] }
 0x13b   :  { %1207 = vperm.xlu1 %2249, %v925_v18  }
 0x13d   :  { %v2901_v54 = vpop.permute.xlu1 %596  ;;  %v2903_v11 = vpop.permute.xlu0 %247 }
 0x13e   :  { %3658 = vst [vmem:[#allocation62_spill] sm:$0xff] %v2901_v54  ;;  %3659 = vst [vmem:[#allocation63_spill] sm:$0xff] %v2903_v11  ;;  %1057 = vperm.xlu0 %2254, %v895_v33   ;;  %v928_v11 = vld [vmem:[%s3588_s2 + $0x1c8] sm:$0xff] }
 0x13f   :  { %1127 = vperm.xlu1 %2249, %v909_v14   ;;  %v896_v33 = vld [vmem:[%s3588_s2 + $0xc8] sm:$0xff] }
 0x141   :  { %v2911_v18 = vpop.permute.xlu1 %604  ;;  %v2913_v53 = vpop.permute.xlu0 %257 }
 0x142   :  { %3660 = vst [vmem:[#allocation64_spill] sm:$0xff] %v2911_v18  ;;  %977 = vperm.xlu0 %2254, %v879_v60   ;;  %v897_v18 = vld [vmem:[%s3588_s2 + $0xd0] sm:$0xff]  ;;  %v880_v60 = vld [vmem:[%s3588_s2 + $0x48] sm:$0xff] }
 0x143   :  { %1132 = vperm.xlu1 %2249, %v910_v31  }
 0x145   :  { %v2921_v14 = vpop.permute.xlu1 %612  ;;  %v2923_v54 = vpop.permute.xlu0 %267 }
 0x146   :  { %1222 = vperm.xlu0 %2254, %v928_v11  }
 0x147   :  { %1062 = vperm.xlu1 %2249, %v896_v33  }
 0x149   :  { %v2931_v31 = vpop.permute.xlu1 %620  ;;  %v2933_v16 = vpop.permute.xlu0 %277 }
 0x14a   :  { %3661 = vst [vmem:[#allocation65_spill] sm:$0xff] %v2933_v16  ;;  %1067 = vperm.xlu0 %2254, %v897_v18   ;;  %v900_v16 = vld [vmem:[%s3588_s2 + $0xe8] sm:$0xff] }
 0x14b   :  { %982 = vperm.xlu1 %2249, %v880_v60   ;;  %v927_v60 = vld [vmem:[%s3588_s2 + $0x1c0] sm:$0xff] }
 0x14d   :  { %v2938_v11 = vpop.permute.xlu1 %628  ;;  %v2940_v33 = vpop.permute.xlu0 %287 }
 0x14e   :  { %3662 = vst [vmem:[#allocation66_spill] sm:$0xff] %v2938_v11  ;;  %3663 = vst [vmem:[#allocation67_spill] sm:$0xff] %v2940_v33  ;;  %987 = vperm.xlu0 %2254, %v881_v15   ;;  %v899_v15 = vld [vmem:[%s3588_s2 + $0xe0] sm:$0xff] }
 0x14f   :  { %2250 = vset.pattern.permute.xlu1 %v3649_v19 }
 0x150   :  { %720 = vperm.xlu1 %2250, %v2498_v35   ;;  %v911_v35 = vld [vmem:[%s3588_s2 + $0x140] sm:$0xff] }
 0x151   :  { %v2947_v25 = vpop.permute.xlu1 %636  ;;  %v2949_v18 = vpop.permute.xlu0 %297 }
 0x152   :  { %3664 = vst [vmem:[#allocation68_spill] sm:$0xff] %v2947_v25  ;;  %3665 = vst [vmem:[#allocation69_spill] sm:$0xff] %v2949_v18  ;;  %1232 = vperm.xlu0 %2254, %v930_v8   ;;  %v883_v8 = vld [vmem:[%s3588_s2 + $0x60] sm:$0xff]  ;;  %v415_v25 = vlaneseq }
 0x154   :  { %2251 = vset.pattern.permute.xlu1 %v3634_v23 }
 0x155   :  { %1217 = vperm.xlu1 %2251, %v927_v60   ;;  %v2958_v33 = vpop.permute.xlu1 %644  ;;  %v2960_v58 = vpop.permute.xlu0 %307  ;;  %v912_v60 = vld [vmem:[%s3588_s2 + $0x148] sm:$0xff] }
 0x156   :  { %3666 = vst [vmem:[#allocation70_spill] sm:$0xff] %v2958_v33  ;;  %3667 = vst [vmem:[#allocation71_spill] sm:$0xff] %v2960_v58  ;;  %1077 = vperm.xlu0 %2254, %v899_v15   ;;  %v932_v15 = vld [vmem:[%s3588_s2 + $0x1e8] sm:$0xff] }
 0x159   :  { %1137 = vperm.xlu1 %2251, %v911_v35   ;;  %v2968_v18 = vpop.permute.xlu1 %652  ;;  %v2970_v55 = vpop.permute.xlu0 %317  ;;  %v898_v35 = vld [vmem:[%s3588_s2 + $0xd8] sm:$0xff] }
 0x15a   :  { %3668 = vst [vmem:[#allocation72_spill] sm:$0xff] %v2968_v18  ;;  %3669 = vst [vmem:[#allocation73_spill] sm:$0xff] %v2970_v55  ;;  %997 = vperm.xlu0 %2254, %v883_v8   ;;  %v901_v8 = vld [vmem:[%s3588_s2 + $0xf0] sm:$0xff] }
 0x15d   :  { %1142 = vperm.xlu1 %2251, %v912_v60   ;;  %v2978_v58 = vpop.permute.xlu1 %660  ;;  %v2980_v33 = vpop.permute.xlu0 %327  ;;  %v882_v60 = vld [vmem:[%s3588_s2 + $0x58] sm:$0xff] }
 0x15e   :  { %3670 = vst [vmem:[#allocation74_spill] sm:$0xff] %v2978_v58  ;;  %3671 = vst [vmem:[#allocation75_spill] sm:$0xff] %v2980_v33  ;;  %1242 = vperm.xlu0 %2254, %v932_v15   ;;  %v885_v15 = vld [vmem:[%s3588_s2 + $0x70] sm:$0xff] }
 0x161   :  { %1072 = vperm.xlu1 %2251, %v898_v35   ;;  %v2988_v55 = vpop.permute.xlu1 %668  ;;  %v2990_v18 = vpop.permute.xlu0 %337  ;;  %v933_v35 = vld [vmem:[%s3588_s2 + $0x1f0] sm:$0xff] }
 0x162   :  { %3672 = vst [vmem:[#allocation76_spill] sm:$0xff] %v2988_v55  ;;  %1087 = vperm.xlu0 %2254, %v901_v8  }
 0x165   :  { %992 = vperm.xlu1 %2251, %v882_v60   ;;  %v677_v33 = vpop.permute.xlu1 %676  ;;  %v2998_v58 = vpop.permute.xlu0 %347  ;;  %v917_v60 = vld [vmem:[%s3588_s2 + $0x170] sm:$0xff] }
 0x166   :  { %1007 = vperm.xlu0 %2254, %v885_v15   ;;  %v929_v15 = vld [vmem:[%s3588_s2 + $0x1d0] sm:$0xff] }
 0x169   :  { %2252 = vset.pattern.permute.xlu1 %v3649_v19  ;;  %v3004_v8 = vpop.permute.xlu1 %684  ;;  %v3006_v55 = vpop.permute.xlu0 %357 }
 0x16a   :  { %3673 = vst [vmem:[#allocation77_spill] sm:$0xff] %v3006_v55  ;;  %728 = vperm.xlu1 %2252, %v2510_v37   ;;  %1247 = vperm.xlu0 %2254, %v933_v35   ;;  %v1447_v37 = vld [vmem:[%s3590_s4] sm:$0xff]  ;;  %v3023_v35 = vshrl.u32 %v415_v25, 7  ;;  %v914_v25 = vld [vmem:[%s3588_s2 + $0x158] sm:$0xff] }
 0x16c   :  { %3675 = vst [vmem:[#allocation79_spill] sm:$0xff] %v3023_v35 }
 0x16d   :  { %v3015_v26 = vpop.permute.xlu1 %692  ;;  %v3017_v24 = vpop.permute.xlu0 %367 }
 0x16e   :  { %3674 = vst [vmem:[#allocation78_spill] sm:$0xff] %v3017_v24  ;;  %2253 = vset.pattern.permute.xlu1 %v3634_v23  ;;  %1167 = vperm.xlu0 %2254, %v917_v60   ;;  %v1449_v60 = vld [vmem:[%s3590_s4 + $0x10] sm:$0xff]  ;;  %v741_v24 = vsub.s32 1, %v3023_v35 }
 0x16f   :  { %1227 = vperm.xlu1 %2253, %v929_v15   ;;  %v3598_v15 = vsub.s32 0, %v3023_v35 }
 0x171   :  { %v3028_v51 = vpop.permute.xlu1 %700  ;;  %v3030_v50 = vpop.permute.xlu0 %377 }
 0x172   :  { %3676 = vst [vmem:[#allocation80_spill] sm:$0xff] %v3028_v51  ;;  %3677 = vst [vmem:[#allocation81_spill] sm:$0xff] %v3030_v50  ;;  %1465 = vperm.xlu0 %2254, %v1447_v37   ;;  %v30_v51 = vld [vmem:[%s3586_s0] sm:$0x3] }
 0x173   :  { %1147 = vperm.xlu1 %2253, %v913_v21   ;;  %v1451_v21 = vld [vmem:[%s3590_s4 + $0x20] sm:$0xff]  ;;  %v3050_v50 = vrot.slane %v30_v51, %v3598_v15  ;;  %v3052_v0 = vrot.slane %v30_v51, %v741_v24  ;;  %v1914_v51 = vld [vmem:[%s3591_s5 + $0x8] sm:$0xff] }
 0x175   :  { %v3043_v62 = vpop.permute.xlu0 %387  ;;  %v435_v24 = vmul.f32 %v3050_v50, %v2832_v57  ;;  %v759_v15 = vmul.f32 %v3052_v0, %v2841_v22  ;;  %v420_v57 = vmul.f32 %v3050_v50, %v2766_v17  ;;  %v1915_v22 = vld [vmem:[%s3591_s5 + $0x10] sm:$0xff]  ;;  %v468_v17 = vmul.f32 %v3050_v50, %v2700_v61 }
 0x176   :  { %3678 = vst [vmem:[#allocation82_spill] sm:$0xff] %v3043_v62  ;;  %v1023_v37 = vpop.permute.xlu1 %1022  ;;  %1475 = vperm.xlu0 %2254, %v1449_v60   ;;  %v436_v60 = vmul.f32 %v3050_v50, %v2588_v1  ;;  %v884_v1 = vld [vmem:[%s3588_s2 + $0x68] sm:$0xff]  ;;  %v775_v61 = vmul.f32 %v3052_v0, %v2921_v14  ;;  %v1917_v14 = vld [vmem:[%s3591_s5 + $0x20] sm:$0xff] }
 0x177   :  { %1152 = vperm.xlu1 %2253, %v914_v25   ;;  %v760_v25 = vmul.f32 %v3052_v0, %v2590_v2  ;;  %v419_v2 = vmul.f32 %v3050_v50, %v2756_v32  ;;  %v823_v11 = vadd.f32 %v759_v15, %v435_v24 }
 0x179   :  { %v3057_v13 = vpop.permute.xlu0 %397 }
 0x17a   :  { %3679 = vst [vmem:[#allocation83_spill] sm:$0xff] %v3057_v13  ;;  %v938_v62 = vpop.permute.xlu1 %937  ;;  %1485 = vperm.xlu0 %2254, %v1451_v21   ;;  %v744_v13 = vmul.f32 %v3052_v0, %v2764_v34  ;;  %v792_v34 = vmul.f32 %v3052_v0, %v2702_v3 }
 0x17b   :  { %1082 = vperm.xlu1 %2253, %v900_v16   ;;  %v824_v16 = vadd.f32 %v760_v25, %v436_v60  ;;  %v791_v60 = vmul.f32 %v3052_v0, %v677_v33  ;;  %v467_v33 = vmul.f32 %v3050_v50, %v2990_v18  ;;  %v451_v18 = vmul.f32 %v3050_v50, %v2913_v53  ;;  %v915_v53 = vld [vmem:[%s3588_s2 + $0x160] sm:$0xff] }
 0x17d   :  { %v3073_v35 = vpop.permute.xlu0 %407  ;;  %v1272_v12 = vadd.f32 %v1023_v37, %v824_v16  ;;  %v855_v3 = vadd.f32 %v791_v60, %v467_v33  ;;  %v839_v60 = vadd.f32 %v775_v61, %v451_v18  ;;  %v422_v61 = vmul.f32 %v3050_v50, %v2538_v44 }
 0x17e   :  { %3680 = vst [vmem:[#allocation84_spill] sm:$0xff] %v3073_v35  ;;  %v1178_v21 = vpop.permute.xlu1 %1177  ;;  %1936 = vperm.xlu0 %2254, %v1914_v51   ;;  %v743_v35 = vmul.f32 %v3052_v0, %v2532_v42  ;;  %v1916_v42 = vld [vmem:[%s3591_s5 + $0x18] sm:$0xff] }
 0x17f   :  { %1002 = vperm.xlu1 %2253, %v884_v1   ;;  %v808_v1 = vadd.f32 %v744_v13, %v420_v57  ;;  %v1336_v15 = vmax.f32 %v1272_v12, 0.0  ;;  %v856_v12 = vadd.f32 %v792_v34, %v468_v17  ;;  %v1303_v57 = vadd.f32 %v1178_v21, %v855_v3  ;;  %v1918_v21 = vld [vmem:[%s3591_s5 + $0x28] sm:$0xff] }
 0x180   :  { %v807_v25 = vadd.f32 %v743_v35, %v419_v2  ;;  %v931_v2 = vld [vmem:[%s3588_s2 + $0x1e0] sm:$0xff]  ;;  %v746_v3 = vmul.f32 %v3052_v0, %v2540_v45  ;;  %v902_v45 = vld [vmem:[%s3588_s2 + $0xf8] sm:$0xff] }
 0x181   :  { %v1018_v32 = vpop.permute.xlu0 %1017 }
 0x182   :  { %v1271_v51 = vadd.f32 %v1018_v32, %v823_v11  ;;  %v1098_v55 = vpop.permute.xlu1 %1097  ;;  %1941 = vperm.xlu0 %2254, %v1915_v22   ;;  %v1255_v35 = vadd.f32 %v938_v62, %v807_v25  ;;  %v452_v62 = vmul.f32 %v3050_v50, %v2644_v27  ;;  %v437_v27 = vmul.f32 %v3050_v50, %v2843_v52 }
 0x183   :  { %2255 = vset.pattern.permute.xlu1 %v3649_v19  ;;  %v762_v52 = vmul.f32 %v3052_v0, %v2597_v7  ;;  %v916_v7 = vld [vmem:[%s3588_s2 + $0x168] sm:$0xff] }
 0x184   :  { %v1335_v11 = vmax.f32 %v1271_v51, 0.0  ;;  %736 = vperm.xlu1 %2255, %v2522_v39   ;;  %v776_v39 = vmul.f32 %v3052_v0, %v2646_v28  ;;  %v1319_v16 = vmax.f32 %v1255_v35, 0.0  ;;  %v761_v28 = vmul.f32 %v3052_v0, %v2851_v56 }
 0x185   :  { %v943_v37 = vpop.permute.xlu0 %942  ;;  %v1287_v56 = vadd.f32 %v1098_v55, %v839_v60  ;;  %v745_v35 = vmul.f32 %v3052_v0, %v2774_v36  ;;  %v421_v55 = vmul.f32 %v3050_v50, %v2530_v41  ;;  %v1919_v36 = vld [vmem:[%s3591_s5 + $0x30] sm:$0xff]  ;;  %v793_v41 = vmul.f32 %v3052_v0, %v3004_v8  ;;  %v1920_v8 = vld [vmem:[%s3591_s5 + $0x38] sm:$0xff] }
 0x186   :  { %v1256_v24 = vadd.f32 %v943_v37, %v808_v1  ;;  %v1028_v19 = vpop.permute.xlu1 %1027  ;;  %1946 = vperm.xlu0 %2254, %v1916_v42   ;;  %v1423_v13 = vpack.c.bf16 %v1336_v15, %v1335_v11  ;;  %v840_v1 = vadd.f32 %v776_v39, %v452_v62  ;;  %v1367_v42 = vmax.f32 %v1303_v57, 0.0 }
 0x187   :  { %v825_v11 = vadd.f32 %v761_v28, %v437_v27  ;;  %v810_v57 = vadd.f32 %v746_v3, %v422_v61  ;;  %v423_v3 = vmul.f32 %v3050_v50, %v2776_v59 }
 0x188   :  { %v1320_v22 = vmax.f32 %v1256_v24, 0.0  ;;  %2256 = vset.pattern.permute.xlu1 %v3634_v23  ;;  %2111 = vmatprep.subr.bf16.mxu0 %v1423_v13  ;;  %v438_v23 = vmul.f32 %v3050_v50, %v2595_v6  ;;  %v1351_v24 = vmax.f32 %v1287_v56, 0.0 }
 0x189   :  { %1237 = vperm.xlu1 %2256, %v931_v2   ;;  %v1183_v32 = vpop.permute.xlu0 %1182  ;;  %v1273_v13 = vadd.f32 %v1028_v19, %v825_v11  ;;  %v470_v19 = vmul.f32 %v3050_v50, %v2707_v4  ;;  %v777_v4 = vmul.f32 %v3052_v0, %v2931_v31  ;;  %v1921_v31 = vld [vmem:[%s3591_s5 + $0x40] sm:$0xff] }
 0x18a   :  { %v1304_v25 = vadd.f32 %v1183_v32, %v856_v12  ;;  %v948_v51 = vpop.permute.xlu1 %947  ;;  %1951 = vperm.xlu0 %2254, %v1917_v14   ;;  %v1415_v17 = vpack.c.bf16 %v1320_v22, %v1319_v16  ;;  %v826_v62 = vadd.f32 %v762_v52, %v438_v23  ;;  %v809_v12 = vadd.f32 %v745_v35, %v421_v55  ;;  %v886_v23 = vld [vmem:[%s3588_s2 + $0x78] sm:$0xff] }
 0x18b   :  { %v794_v16 = vmul.f32 %v3052_v0, %v2709_v29  ;;  %v469_v22 = vmul.f32 %v3050_v50, %v2998_v58  ;;  %v1337_v27 = vmax.f32 %v1273_v13, 0.0  ;;  %v454_v58 = vmul.f32 %v3050_v50, %v2651_v30 }
 0x18c   :  { %v1368_v34 = vmax.f32 %v1304_v25, 0.0  ;;  %2112 = vmatpush3.bf16.msra.mxu0 %v1415_v17  ;;  %v1257_v32 = vadd.f32 %v948_v51, %v809_v12  ;;  %v778_v51 = vmul.f32 %v3052_v0, %v2653_v40  ;;  %v763_v40 = vmul.f32 %v3052_v0, %v2861_v5 }
 0x18d   :  { %1157 = vperm.xlu1 %2256, %v915_v53   ;;  %v1103_v33 = vpop.permute.xlu0 %1102  ;;  %v857_v25 = vadd.f32 %v793_v41, %v469_v22  ;;  %v858_v52 = vadd.f32 %v794_v16, %v470_v19  ;;  %v2259_v41 = vld [vmem:[%s3589_s3 + $0x4] ss:$16 sps:$4 sm:$0xff]  }
 0x18e   :  { %v1288_v15 = vadd.f32 %v1103_v33, %v840_v1  ;;  %v1188_v6 = vpop.permute.xlu1 %1187  ;;  %1956 = vperm.xlu0 %2254, %v1918_v21   ;;  %v1439_v37 = vpack.c.bf16 %v1368_v34, %v1367_v42  ;;  %v453_v21 = vmul.f32 %v3050_v50, %v2923_v54  ;;  %v1321_v56 = vmax.f32 %v1257_v32, 0.0  ;;  %v934_v54 = vld [vmem:[%s3588_s2 + $0x1f8] sm:$0xff]  ;;  %1735 = vmatprep.mubr.bf16.mxu0 %v2259_v41  ;;  %v3689_v41 = vld [vmem:[#allocation7_spill] sm:$0xff] }
 0x18f   :  { %v1305_v34 = vadd.f32 %v1188_v6, %v857_v25  ;;  %v439_v42 = vmul.f32 %v3050_v50, %v2853_v20  ;;  %v440_v6 = vmul.f32 %v3050_v50, %v2602_v9  ;;  %v764_v20 = vmul.f32 %v3052_v0, %v2604_v10 }
 0x190   :  { %v1352_v2 = vmax.f32 %v1288_v15, 0.0  ;;  %2175 = vmatprep.subr.bf16.mxu1 %v1439_v37  ;;  %v841_v33 = vadd.f32 %v777_v4, %v453_v21  ;;  %v1922_v37 = vld [vmem:[%s3591_s5 + $0x48] sm:$0xff]  ;;  %v842_v61 = vadd.f32 %v778_v51, %v454_v58  ;;  %v747_v9 = vmul.f32 %v3052_v0, %v2784_v38  ;;  %v1923_v38 = vld [vmem:[%s3591_s5 + $0x50] sm:$0xff] }
 0x191   :  { %1162 = vperm.xlu1 %2256, %v916_v7   ;;  %v1033_v39 = vpop.permute.xlu0 %1032  ;;  %v1369_v5 = vmax.f32 %v1305_v34, 0.0  ;;  %v456_v4 = vmul.f32 %v3050_v50, %v2658_v46  ;;  %v780_v25 = vmul.f32 %v3052_v0, %v2660_v49  ;;  %v1925_v46 = vld [vmem:[%s3591_s5 + $0x60] sm:$0xff]  ;;  %v2262_v49 = vld [vmem:[%s3589_s3 + $0xc] ss:$16 sps:$4 sm:$0xff]  }
 0x192   :  { %v1274_v14 = vadd.f32 %v1033_v39, %v826_v62  ;;  %v1108_v44 = vpop.permute.xlu1 %1107  ;;  %1961 = vperm.xlu0 %2254, %v1919_v36   ;;  %v1431_v18 = vpack.c.bf16 %v1352_v2, %v1351_v24  ;;  %v827_v24 = vadd.f32 %v763_v40, %v439_v42  ;;  %v918_v2 = vld [vmem:[%s3588_s2 + $0x178] sm:$0xff]  ;;  %v424_v62 = vmul.f32 %v3050_v50, %v2546_v47 }
 0x193   :  { %v1289_v7 = vadd.f32 %v1108_v44, %v841_v33  ;;  %v748_v39 = vmul.f32 %v3052_v0, %v2548_v48  ;;  %v472_v47 = vmul.f32 %v3050_v50, %v2714_v43  ;;  %v811_v19 = vadd.f32 %v747_v9, %v423_v3  ;;  %v3684_v33 = vld [vmem:[#allocation17_spill] sm:$0xff]  ;;  %1832 = vmatprep.mubr.bf16.mxu1 %v2262_v49 }
 0x194   :  { %v1338_v28 = vmax.f32 %v1274_v14, 0.0  ;;  %2176 = vmatpush3.bf16.msra.mxu1 %v1431_v18  ;;  %v828_v18 = vadd.f32 %v764_v20, %v440_v6  ;;  %v795_v43 = vmul.f32 %v3052_v0, %v3015_v26  ;;  %v1450_v26 = vld [vmem:[%s3590_s4 + $0x18] sm:$0xff]  ;;  %v844_v20 = vadd.f32 %v780_v25, %v456_v4  ;;  %v1453_v25 = vld [vmem:[%s3590_s4 + $0x30] sm:$0xff] }
 0x195   :  { %1092 = vperm.xlu1 %2256, %v902_v45   ;;  %v953_v60 = vpop.permute.xlu0 %952  ;;  %v1353_v12 = vmax.f32 %v1289_v7, 0.0  ;;  %v796_v45 = vmul.f32 %v3052_v0, %v2716_v63  ;;  %v812_v22 = vadd.f32 %v748_v39, %v424_v62  ;;  %v3686_v7 = vld [vmem:[#allocation55_spill] sm:$0xff]  ;;  %v3688_v62 = vld [vmem:[#allocation6_spill] sm:$0xff] }
 0x196   :  { %v1424_v17 = vpack.c.bf16 %v1338_v28, %v1337_v27  ;;  %v1258_v29 = vadd.f32 %v953_v60, %v810_v57  ;;  %v1038_v53 = vpop.permute.xlu1 %1037  ;;  %1966 = vperm.xlu0 %2254, %v1920_v8   ;;  %v1448_v8 = vld [vmem:[%s3590_s4 + $0x8] sm:$0xff]  ;;  %v1924_v27 = vld [vmem:[%s3591_s5 + $0x58] sm:$0xff]  ;;  %v426_v39 = vmul.f32 %v3050_v50, %v3688_v62 }
 0x197   :  { %v1275_v14 = vadd.f32 %v1038_v53, %v827_v24  ;;  %v860_v58 = vadd.f32 %v796_v45, %v472_v47  ;;  %v1452_v47 = vld [vmem:[%s3590_s4 + $0x28] sm:$0xff]  ;;  %v3699_v62 = vld [vmem:[#allocation57_spill] sm:$0xff] }
 0x198   :  { %v1322_v1 = vmax.f32 %v1258_v29, 0.0  ;;  %2113 = vmatprep.subr.bf16.mxu0 %v1424_v17  ;;  %v3681_v29 = vld [vmem:[#allocation77_spill] sm:$0xff] }
 0x199   :  { %1012 = vperm.xlu1 %2256, %v886_v23   ;;  %v1193_v30 = vpop.permute.xlu0 %1192  ;;  %v1339_v32 = vmax.f32 %v1275_v14, 0.0  ;;  %v471_v53 = vmul.f32 %v3050_v50, %v3681_v29 }
 0x19a   :  { %v1416_v35 = vpack.c.bf16 %v1322_v1, %v1321_v56  ;;  %v1306_v11 = vadd.f32 %v1193_v30, %v858_v52  ;;  %v958_v15 = vpop.permute.xlu1 %957  ;;  %1971 = vperm.xlu0 %2254, %v1921_v31   ;;  %v3682_v52 = vld [vmem:[#allocation66_spill] sm:$0xff]  ;;  %v3683_v30 = vld [vmem:[#allocation16_spill] sm:$0xff] }
 0x19b   :  { %v1259_v28 = vadd.f32 %v958_v15, %v811_v19  ;;  %v779_v31 = vmul.f32 %v3052_v0, %v3682_v52  ;;  %v859_v42 = vadd.f32 %v795_v43, %v471_v53  ;;  %v442_v40 = vmul.f32 %v3050_v50, %v3683_v30  ;;  %v3685_v15 = vld [vmem:[#allocation65_spill] sm:$0xff]  ;;  %v3691_v19 = vld [vmem:[#allocation46_spill] sm:$0xff] }
 0x19c   :  { %v1370_v55 = vmax.f32 %v1306_v11, 0.0  ;;  %2114 = vmatpush3.bf16.msra.mxu0 %v1416_v35  ;;  %v766_v35 = vmul.f32 %v3052_v0, %v3684_v33 }
 0x19d   :  { %1252 = vperm.xlu1 %2256, %v934_v54   ;;  %v1113_v36 = vpop.permute.xlu0 %1112  ;;  %v1323_v21 = vmax.f32 %v1259_v28, 0.0  ;;  %v455_v54 = vmul.f32 %v3050_v50, %v3685_v15 }
 0x19e   :  { %v1440_v13 = vpack.c.bf16 %v1370_v55, %v1369_v5  ;;  %v1290_v10 = vadd.f32 %v1113_v36, %v842_v61  ;;  %1976 = vperm.xlu0 %2254, %v1922_v37   ;;  %v1913_v5 = vld [vmem:[%s3591_s5] sm:$0xff]  ;;  %v441_v55 = vmul.f32 %v3050_v50, %v3686_v7  ;;  %v3687_v61 = vld [vmem:[#allocation56_spill] sm:$0xff] }
 0x19f   :  { %v3194_v59 = vpop.permute.xlu1 %704  ;;  %v765_v3 = vmul.f32 %v3052_v0, %v3687_v61  ;;  %v1927_v36 = vld [vmem:[%s3591_s5 + $0x70] sm:$0xff] }
 0x1a0   :  { %v1354_v44 = vmax.f32 %v1290_v10, 0.0  ;;  %2177 = vmatprep.subr.bf16.mxu1 %v1440_v13  ;;  %v798_v29 = vmul.f32 %v3052_v0, %v3194_v59  ;;  %v1454_v59 = vld [vmem:[%s3590_s4 + $0x38] sm:$0xff] }
 0x1a1   :  { %1172 = vperm.xlu1 %2256, %v918_v2   ;;  %v1043_v48 = vpop.permute.xlu0 %1042  ;;  %v843_v2 = vadd.f32 %v779_v31, %v455_v54 }
 0x1a2   :  { %v1432_v16 = vpack.c.bf16 %v1354_v44, %v1353_v12  ;;  %v1276_v57 = vadd.f32 %v1043_v48, %v828_v18  ;;  %1981 = vperm.xlu0 %2254, %v1923_v38   ;;  %v750_v12 = vmul.f32 %v3052_v0, %v3689_v41  ;;  %v830_v44 = vadd.f32 %v766_v35, %v442_v40  ;;  %v3690_v48 = vld [vmem:[#allocation45_spill] sm:$0xff] }
 0x1a3   :  { %v425_v45 = vmul.f32 %v3050_v50, %v3690_v48  ;;  %v3702_v48 = vld [vmem:[#allocation19_spill] sm:$0xff] }
 0x1a4   :  { %v1340_v60 = vmax.f32 %v1276_v57, 0.0  ;;  %v1203_v63 = vpop.permute.xlu1 %1202  ;;  %2178 = vmatpush3.bf16.msra.mxu1 %v1432_v16  ;;  %v749_v16 = vmul.f32 %v3052_v0, %v3691_v19  ;;  %v2046_v57 = vld [vmem:[#allocation2] sm:$0x1] }
 0x1a5   :  { %1470 = vperm.xlu1 %2256, %v1448_v8   ;;  %v963_v17 = vpop.permute.xlu0 %962  ;;  %v1308_v56 = vadd.f32 %v1203_v63, %v860_v58  ;;  %v814_v63 = vadd.f32 %v750_v12, %v426_v39  ;;  %v443_v39 = vmul.f32 %v3050_v50, %v3699_v62 }
 0x1a6   :  { %v1425_v23 = vpack.c.bf16 %v1340_v60, %v1339_v32  ;;  %v1260_v51 = vadd.f32 %v963_v17, %v812_v22  ;;  %1986 = vperm.xlu0 %2254, %v1924_v27   ;;  %v829_v32 = vadd.f32 %v765_v3, %v441_v55  ;;  %v813_v17 = vadd.f32 %v749_v16, %v425_v45  ;;  %v3696_v55 = vld [vmem:[#allocation26_spill] sm:$0xff]  ;;  %v3697_v3 = vld [vmem:[#allocation27_spill] sm:$0xff] }
 0x1a7   :  { %v1372_v9 = vmax.f32 %v1308_v56, 0.0  ;;  %v458_v61 = vmul.f32 %v3050_v50, %v3696_v55  ;;  %v768_v45 = vmul.f32 %v3052_v0, %v3702_v48 }
 0x1a8   :  { %v1324_v34 = vmax.f32 %v1260_v51, 0.0  ;;  %v1123_v1 = vpop.permute.xlu1 %1122  ;;  %2115 = vmatprep.subr.bf16.mxu0 %v1425_v23  ;;  %v3692_v51 = vld [vmem:[#allocation80_spill] sm:$0xff] }
 0x1a9   :  { %1480 = vperm.xlu1 %2256, %v1450_v26   ;;  %v1198_v11 = vpop.permute.xlu0 %1197  ;;  %v1292_v24 = vadd.f32 %v1123_v1, %v844_v20  ;;  %v797_v26 = vmul.f32 %v3052_v0, %v3692_v51  ;;  %v3695_v20 = vld [vmem:[#allocation68_spill] sm:$0xff] }
 0x1aa   :  { %v1417_v6 = vpack.c.bf16 %v1324_v34, %v1323_v21  ;;  %v1307_v37 = vadd.f32 %v1198_v11, %v859_v42  ;;  %1991 = vperm.xlu0 %2254, %v1925_v46   ;;  %v3693_v46 = vld [vmem:[#allocation36_spill] sm:$0xff]  ;;  %v3694_v34 = vld [vmem:[#allocation78_spill] sm:$0xff] }
 0x1ab   :  { %v1356_v8 = vmax.f32 %v1292_v24, 0.0  ;;  %v474_v49 = vmul.f32 %v3050_v50, %v3693_v46  ;;  %v473_v1 = vmul.f32 %v3050_v50, %v3694_v34 }
 0x1ac   :  { %v1371_v13 = vmax.f32 %v1307_v37, 0.0  ;;  %v1053_v10 = vpop.permute.xlu1 %1052  ;;  %2116 = vmatpush3.bf16.msra.mxu0 %v1417_v6  ;;  %v1455_v6 = vld [vmem:[%s3590_s4 + $0x40] sm:$0xff]  ;;  %v781_v37 = vmul.f32 %v3052_v0, %v3695_v20 }
 0x1ad   :  { %1931 = vperm.xlu1 %2256, %v1913_v5   ;;  %v1118_v38 = vpop.permute.xlu0 %1117  ;;  %v1278_v22 = vadd.f32 %v1053_v10, %v830_v44  ;;  %v862_v40 = vadd.f32 %v798_v29, %v474_v49  ;;  %v861_v35 = vadd.f32 %v797_v26, %v473_v1  ;;  %v3701_v44 = vld [vmem:[#allocation18_spill] sm:$0xff] }
 0x1ae   :  { %v1441_v14 = vpack.c.bf16 %v1372_v9, %v1371_v13  ;;  %v1291_v18 = vadd.f32 %v1118_v38, %v843_v2  ;;  %2001 = vperm.xlu0 %2254, %v1927_v36   ;;  %v782_v36 = vmul.f32 %v3052_v0, %v3697_v3  ;;  %v3698_v9 = vld [vmem:[#allocation67_spill] sm:$0xff]  ;;  %v3700_v38 = vld [vmem:[#allocation58_spill] sm:$0xff]  ;;  %v3709_v3 = vld [vmem:[#allocation37_spill] sm:$0xff] }
 0x1af   :  { %v1342_v53 = vmax.f32 %v1278_v22, 0.0  ;;  %v457_v24 = vmul.f32 %v3050_v50, %v3698_v9  ;;  %v1456_v2 = vld [vmem:[%s3590_s4 + $0x48] sm:$0xff]  ;;  %v767_v41 = vmul.f32 %v3052_v0, %v3700_v38  ;;  %v1461_v9 = vld [vmem:[%s3590_s4 + $0x70] sm:$0xff] }
 0x1b0   :  { %v1355_v27 = vmax.f32 %v1291_v18, 0.0  ;;  %v973_v43 = vpop.permute.xlu1 %972  ;;  %2179 = vmatprep.subr.bf16.mxu1 %v1441_v14  ;;  %v444_v18 = vmul.f32 %v3050_v50, %v3701_v44  ;;  %v846_v16 = vadd.f32 %v782_v36, %v458_v61  ;;  %v3703_v22 = vld [vmem:[#allocation47_spill] sm:$0xff]  ;;  %v3711_v38 = vld [vmem:[#allocation28_spill] sm:$0xff] }
 0x1b1   :  { %1490 = vperm.xlu1 %2256, %v1452_v47   ;;  %v1048_v28 = vpop.permute.xlu0 %1047  ;;  %v1262_v23 = vadd.f32 %v973_v43, %v814_v63  ;;  %v845_v14 = vadd.f32 %v781_v37, %v457_v24  ;;  %v3704_v43 = vld [vmem:[#allocation48_spill] sm:$0xff]  ;;  %v3708_v37 = vld [vmem:[#allocation81_spill] sm:$0xff] }
 0x1b2   :  { %v1433_v60 = vpack.c.bf16 %v1356_v8, %v1355_v27  ;;  %v1277_v4 = vadd.f32 %v1048_v28, %v829_v32  ;;  %2049 = vperm.xlu0 %2254, %v2046_v57   ;;  %v1457_v8 = vld [vmem:[%s3590_s4 + $0x50] sm:$0xff]  ;;  %v427_v27 = vmul.f32 %v3050_v50, %v3703_v22  ;;  %v751_v32 = vmul.f32 %v3052_v0, %v3704_v43 }
 0x1b3   :  { %v1326_v42 = vmax.f32 %v1262_v23, 0.0  ;;  %v831_v28 = vadd.f32 %v767_v41, %v443_v39  ;;  %v3705_v63 = vld [vmem:[#allocation8_spill] sm:$0xff]  ;;  %v460_v41 = vmul.f32 %v3050_v50, %v3711_v38 }
 0x1b4   :  { %v1341_v58 = vmax.f32 %v1277_v4, 0.0  ;;  %2180 = vmatpush3.bf16.msra.mxu1 %v1433_v60  ;;  %v428_v4 = vmul.f32 %v3050_v50, %v3705_v63  ;;  %v815_v46 = vadd.f32 %v751_v32, %v427_v27  ;;  %v3715_v27 = vld [vmem:[#allocation20_spill] sm:$0xff] }
 0x1b5   :  { %1495 = vperm.xlu1 %2256, %v1453_v25   ;;  %v3265_v52 = vpop.permute.xlu1 %712  ;;  %v968_v31 = vpop.permute.xlu0 %967  ;;  %v3706_v25 = vld [vmem:[#allocation9_spill] sm:$0xff]  ;;  %v446_v43 = vmul.f32 %v3050_v50, %v3715_v27 }
 0x1b6   :  { %v1426_v21 = vpack.c.bf16 %v1342_v53, %v1341_v58  ;;  %v1261_v56 = vadd.f32 %v968_v31, %v813_v17  ;;  %v752_v17 = vmul.f32 %v3052_v0, %v3706_v25  ;;  %v832_v58 = vadd.f32 %v768_v45, %v444_v18  ;;  %v1458_v31 = vld [vmem:[%s3590_s4 + $0x58] sm:$0xff] }
 0x1b7   :  { %v3713_v18 = vld [vmem:[#allocation69_spill] sm:$0xff] }
 0x1b8   :  { %v1325_v30 = vmax.f32 %v1261_v56, 0.0  ;;  %2117 = vmatprep.subr.bf16.mxu0 %v1426_v21  ;;  %v816_v1 = vadd.f32 %v752_v17, %v428_v4  ;;  %v3717_v4 = vld [vmem:[#allocation59_spill] sm:$0xff] }
 0x1b9   :  { %1500 = vperm.xlu1 %2256, %v1454_v59   ;;  %v1213_v33 = vpop.permute.xlu0 %1212  ;;  %v445_v25 = vmul.f32 %v3050_v50, %v3717_v4 }
 0x1ba   :  { %v1418_v11 = vpack.c.bf16 %v1326_v42, %v1325_v30  ;;  %v1310_v15 = vadd.f32 %v1213_v33, %v862_v40  ;;  %v1208_v54 = vpop.permute.xlu1 %1207  ;;  %v1459_v30 = vld [vmem:[%s3590_s4 + $0x60] sm:$0xff] }
 0x1bb   :  { %v1309_v5 = vadd.f32 %v1208_v54, %v861_v35  ;;  %v800_v35 = vmul.f32 %v3052_v0, %v3265_v52  ;;  %v1460_v54 = vld [vmem:[%s3590_s4 + $0x68] sm:$0xff]  ;;  %v799_v52 = vmul.f32 %v3052_v0, %v3709_v3 }
 0x1bc   :  { %v1374_v7 = vmax.f32 %v1310_v15, 0.0  ;;  %2118 = vmatpush3.bf16.msra.mxu0 %v1418_v11 }
 0x1bd   :  { %v1373_v13 = vmax.f32 %v1309_v5, 0.0  ;;  %1505 = vperm.xlu1 %2256, %v1455_v6   ;;  %v1058_v47 = vpop.permute.xlu0 %1057  ;;  %v3707_v6 = vld [vmem:[#allocation38_spill] sm:$0xff]  ;;  %v475_v5 = vmul.f32 %v3050_v50, %v3708_v37 }
 0x1be   :  { %v1128_v10 = vpop.permute.xlu1 %1127  ;;  %v1279_v29 = vadd.f32 %v1058_v47, %v831_v28  ;;  %v476_v20 = vmul.f32 %v3050_v50, %v3707_v6  ;;  %v459_v47 = vmul.f32 %v3050_v50, %v3713_v18  ;;  %v1926_v28 = vld [vmem:[%s3591_s5 + $0x68] sm:$0xff] }
 0x1bf   :  { %v1442_v12 = vpack.c.bf16 %v1374_v7, %v1373_v13  ;;  %v1293_v19 = vadd.f32 %v1128_v10, %v845_v14  ;;  %v863_v13 = vadd.f32 %v799_v52, %v475_v5  ;;  %v3712_v14 = vld [vmem:[#allocation29_spill] sm:$0xff] }
 0x1c0   :  { %v1343_v56 = vmax.f32 %v1279_v29, 0.0  ;;  %v864_v36 = vadd.f32 %v800_v35, %v476_v20  ;;  %v784_v44 = vmul.f32 %v3052_v0, %v3712_v14 }
 0x1c1   :  { %1510 = vperm.xlu1 %2256, %v1456_v2   ;;  %2181 = vmatprep.subr.bf16.mxu1 %v1442_v12  ;;  %v1357_v53 = vmax.f32 %v1293_v19, 0.0  ;;  %v978_v51 = vpop.permute.xlu0 %977  ;;  %v3710_v2 = vld [vmem:[#allocation70_spill] sm:$0xff]  ;;  %v1462_v12 = vld [vmem:[%s3590_s4 + $0x78] sm:$0xff] }
 0x1c2   :  { %v1133_v57 = vpop.permute.xlu1 %1132  ;;  %v1263_v59 = vadd.f32 %v978_v51, %v815_v46  ;;  %v783_v62 = vmul.f32 %v3052_v0, %v3710_v2  ;;  %v848_v29 = vadd.f32 %v784_v44, %v460_v41  ;;  %v3719_v51 = vld [vmem:[#allocation50_spill] sm:$0xff]  ;;  %v3724_v41 = vld [vmem:[#allocation39_spill] sm:$0xff] }
 0x1c3   :  { %v1294_v60 = vadd.f32 %v1133_v57, %v846_v16  ;;  %v3714_v16 = vld [vmem:[#allocation60_spill] sm:$0xff] }
 0x1c4   :  { %v1327_v11 = vmax.f32 %v1263_v59, 0.0  ;;  %v769_v57 = vmul.f32 %v3052_v0, %v3714_v16  ;;  %v847_v22 = vadd.f32 %v783_v62, %v459_v47  ;;  %v3725_v47 = vld [vmem:[#allocation72_spill] sm:$0xff] }
 0x1c5   :  { %v1358_v23 = vmax.f32 %v1294_v60, 0.0  ;;  %1515 = vperm.xlu1 %2256, %v1457_v8   ;;  %v1223_v61 = vpop.permute.xlu0 %1222  ;;  %v3716_v60 = vld [vmem:[#allocation21_spill] sm:$0xff] }
 0x1c6   :  { %v1063_v26 = vpop.permute.xlu1 %1062  ;;  %v1312_v24 = vadd.f32 %v1223_v61, %v864_v36  ;;  %v770_v63 = vmul.f32 %v3052_v0, %v3716_v60  ;;  %v3722_v36 = vld [vmem:[#allocation40_spill] sm:$0xff]  ;;  %v3729_v60 = vld [vmem:[#allocation62_spill] sm:$0xff] }
 0x1c7   :  { %v1434_v49 = vpack.c.bf16 %v1358_v23, %v1357_v53  ;;  %v1280_v21 = vadd.f32 %v1063_v26, %v832_v58  ;;  %v3718_v23 = vld [vmem:[#allocation49_spill] sm:$0xff]  ;;  %v753_v26 = vmul.f32 %v3052_v0, %v3719_v51 }
 0x1c8   :  { %v1376_v48 = vmax.f32 %v1312_v24, 0.0  ;;  %v429_v58 = vmul.f32 %v3050_v50, %v3718_v23  ;;  %v3731_v23 = vld [vmem:[#allocation23_spill] sm:$0xff]  ;;  %v3732_v51 = vld [vmem:[#allocation61_spill] sm:$0xff] }
 0x1c9   :  { %v1344_v34 = vmax.f32 %v1280_v21, 0.0  ;;  %1520 = vperm.xlu1 %2256, %v1458_v31   ;;  %2182 = vmatpush3.bf16.msra.mxu1 %v1434_v49  ;;  %v1068_v32 = vpop.permute.xlu0 %1067  ;;  %v833_v31 = vadd.f32 %v769_v57, %v445_v25  ;;  %v3720_v49 = vld [vmem:[#allocation10_spill] sm:$0xff]  ;;  %v3727_v57 = vld [vmem:[#allocation31_spill] sm:$0xff] }
 0x1ca   :  { %v983_v42 = vpop.permute.xlu1 %982  ;;  %v430_v21 = vmul.f32 %v3050_v50, %v3720_v49 }
 0x1cb   :  { %v1427_v40 = vpack.c.bf16 %v1344_v34, %v1343_v56  ;;  %v1264_v33 = vadd.f32 %v983_v42, %v816_v1  ;;  %v3721_v56 = vld [vmem:[#allocation11_spill] sm:$0xff]  ;;  %v1928_v34 = vld [vmem:[%s3591_s5 + $0x78] sm:$0xff]  ;;  %v1281_v1 = vadd.f32 %v1068_v32, %v833_v31 }
 0x1cc   :  { %v754_v59 = vmul.f32 %v3052_v0, %v3721_v56 }
 0x1cd   :  { %v1328_v15 = vmax.f32 %v1264_v33, 0.0  ;;  %1525 = vperm.xlu1 %2256, %v1459_v30   ;;  %2119 = vmatprep.subr.bf16.mxu0 %v1427_v40  ;;  %v834_v40 = vadd.f32 %v770_v63, %v446_v43  ;;  %v988_v33 = vpop.permute.xlu0 %987  ;;  %v1345_v6 = vmax.f32 %v1281_v1, 0.0  ;;  %v771_v63 = vmul.f32 %v3052_v0, %v3729_v60  ;;  %v3742_v60 = vld [vmem:[#allocation33_spill] sm:$0xff] }
 0x1ce   :  { %v818_v5 = vadd.f32 %v754_v59, %v430_v21  ;;  %v3733_v21 = vld [vmem:[#allocation51_spill] sm:$0xff]  ;;  %v3734_v59 = vld [vmem:[#allocation52_spill] sm:$0xff] }
 0x1cf   :  { %v1419_v7 = vpack.c.bf16 %v1328_v15, %v1327_v11  ;;  %v721_v55 = vpop.permute.xlu1 %720  ;;  %v817_v11 = vadd.f32 %v753_v26, %v429_v58  ;;  %v772_v58 = vmul.f32 %v3052_v0, %v3731_v23  ;;  %v447_v26 = vmul.f32 %v3050_v50, %v3732_v51  ;;  %v3744_v23 = vld [vmem:[#allocation64_spill] sm:$0xff] }
 0x1d0   :  { %v802_v61 = vmul.f32 %v3052_v0, %v721_v55  ;;  %v431_v56 = vmul.f32 %v3050_v50, %v3733_v21 }
 0x1d1   :  { %1530 = vperm.xlu1 %2256, %v1460_v54   ;;  %2120 = vmatpush3.bf16.msra.mxu0 %v1419_v7  ;;  %v1265_v20 = vadd.f32 %v988_v33, %v817_v11  ;;  %v1233_v14 = vpop.permute.xlu0 %1232  ;;  %v835_v1 = vadd.f32 %v771_v63, %v447_v26  ;;  %v3736_v33 = vld [vmem:[#allocation13_spill] sm:$0xff]  ;;  %v788_v63 = vmul.f32 %v3052_v0, %v3742_v60  ;;  %v3758_v60 = vld [vmem:[#allocation75_spill] sm:$0xff] }
 0x1d3   :  { %v1329_v24 = vmax.f32 %v1265_v20, 0.0 }
 0x1d4   :  { %v1218_v10 = vpop.permute.xlu1 %1217 }
 0x1d5   :  { %v1311_v39 = vadd.f32 %v1218_v10, %v863_v13  ;;  %1535 = vperm.xlu1 %2256, %v1461_v9   ;;  %v478_v9 = vmul.f32 %v3050_v50, %v3722_v36  ;;  %v3723_v10 = vld [vmem:[#allocation82_spill] sm:$0xff] }
 0x1d6   :  { %v477_v2 = vmul.f32 %v3050_v50, %v3723_v10 }
 0x1d7   :  { %v1375_v45 = vmax.f32 %v1311_v39, 0.0  ;;  %v866_v62 = vadd.f32 %v802_v61, %v478_v9 }
 0x1d8   :  { %v1138_v19 = vpop.permute.xlu1 %1137 }
 0x1d9   :  { %v1443_v8 = vpack.c.bf16 %v1376_v48, %v1375_v45  ;;  %1540 = vperm.xlu1 %2256, %v1462_v12   ;;  %v1295_v17 = vadd.f32 %v1138_v19, %v847_v22  ;;  %v801_v12 = vmul.f32 %v3052_v0, %v3724_v41  ;;  %v1314_v55 = vadd.f32 %v1233_v14, %v866_v62  ;;  %v3726_v19 = vld [vmem:[#allocation30_spill] sm:$0xff]  ;;  %v3728_v22 = vld [vmem:[#allocation71_spill] sm:$0xff] }
 0x1da   :  { %v785_v48 = vmul.f32 %v3052_v0, %v3725_v47  ;;  %v462_v16 = vmul.f32 %v3050_v50, %v3726_v19  ;;  %v461_v27 = vmul.f32 %v3050_v50, %v3728_v22  ;;  %v3737_v62 = vld [vmem:[#allocation42_spill] sm:$0xff]  ;;  %v3738_v14 = vld [vmem:[#allocation83_spill] sm:$0xff] }
 0x1db   :  { %2183 = vmatprep.subr.bf16.mxu1 %v1443_v8  ;;  %v1359_v42 = vmax.f32 %v1295_v17, 0.0  ;;  %v865_v44 = vadd.f32 %v801_v12, %v477_v2  ;;  %v786_v8 = vmul.f32 %v3052_v0, %v3727_v57  ;;  %v1378_v43 = vmax.f32 %v1314_v55, 0.0  ;;  %v3730_v17 = vld [vmem:[#allocation22_spill] sm:$0xff] }
 0x1dc   :  { %v1143_v53 = vpop.permute.xlu1 %1142  ;;  %v849_v25 = vadd.f32 %v785_v48, %v461_v27  ;;  %v479_v55 = vmul.f32 %v3050_v50, %v3738_v14 }
 0x1dd   :  { %v1296_v46 = vadd.f32 %v1143_v53, %v848_v29  ;;  %1996 = vperm.xlu1 %2256, %v1926_v28   ;;  %v448_v29 = vmul.f32 %v3050_v50, %v3730_v17  ;;  %v1078_v53 = vpop.permute.xlu0 %1077 }
 0x1de   :  { %v1283_v11 = vadd.f32 %v1078_v53, %v835_v1 }
 0x1df   :  { %v1360_v30 = vmax.f32 %v1296_v46, 0.0  ;;  %v850_v46 = vadd.f32 %v786_v8, %v462_v16  ;;  %v3740_v8 = vld [vmem:[#allocation74_spill] sm:$0xff] }
 0x1e0   :  { %v1073_v35 = vpop.permute.xlu1 %1072  ;;  %v787_v22 = vmul.f32 %v3052_v0, %v3740_v8 }
 0x1e1   :  { %v1435_v15 = vpack.c.bf16 %v1360_v30, %v1359_v42  ;;  %v1282_v54 = vadd.f32 %v1073_v35, %v834_v40  ;;  %2006 = vperm.xlu1 %2256, %v1928_v34   ;;  %v755_v34 = vmul.f32 %v3052_v0, %v3734_v59  ;;  %v3735_v30 = vld [vmem:[#allocation12_spill] sm:$0xff]  ;;  %v756_v35 = vmul.f32 %v3052_v0, %v3736_v33  ;;  %v998_v20 = vpop.permute.xlu0 %997 }
 0x1e2   :  { %v432_v40 = vmul.f32 %v3050_v50, %v3735_v30 }
 0x1e3   :  { %v1346_v37 = vmax.f32 %v1282_v54, 0.0  ;;  %2184 = vmatpush3.bf16.msra.mxu1 %v1435_v15 }
 0x1e4   :  { %v993_v7 = vpop.permute.xlu1 %992  ;;  %v820_v9 = vadd.f32 %v756_v35, %v432_v40  ;;  %v3748_v40 = vld [vmem:[#allocation53_spill] sm:$0xff]  ;;  %v3749_v35 = vld [vmem:[#allocation54_spill] sm:$0xff] }
 0x1e5   :  { %v1428_v3 = vpack.c.bf16 %v1346_v37, %v1345_v6  ;;  %v1266_v52 = vadd.f32 %v993_v7, %v818_v5  ;;  %v836_v6 = vadd.f32 %v772_v58, %v448_v29  ;;  %v819_v5 = vadd.f32 %v755_v34, %v431_v56  ;;  %v1243_v48 = vpop.permute.xlu0 %1242  ;;  %v3747_v56 = vld [vmem:[#allocation63_spill] sm:$0xff] }
 0x1e6   :  { %v773_v58 = vmul.f32 %v3052_v0, %v3744_v23  ;;  %v449_v59 = vmul.f32 %v3050_v50, %v3747_v56  ;;  %v433_v33 = vmul.f32 %v3050_v50, %v3748_v40  ;;  %v2265_v40 = vld [vmem:[%s3589_s3 + $0x20] ss:$16 sps:$4 sm:$0xff]  }
 0x1e7   :  { %v1330_v13 = vmax.f32 %v1266_v52, 0.0  ;;  %2121 = vmatprep.subr.bf16.mxu0 %v1428_v3  ;;  %v1347_v3 = vmax.f32 %v1283_v11, 0.0  ;;  %v1267_v52 = vadd.f32 %v998_v20, %v819_v5  ;;  %v757_v11 = vmul.f32 %v3052_v0, %v3749_v35  ;;  %v2268_v35 = vld [vmem:[%s3589_s3 + $0x2c] ss:$16 sps:$4 sm:$0xff]  }
 0x1e9   :  { %v1420_v39 = vpack.c.bf16 %v1330_v13, %v1329_v24  ;;  %v729_v38 = vpop.permute.xlu1 %728  ;;  %v1331_v41 = vmax.f32 %v1267_v52, 0.0 }
 0x1ea   :  { %v804_v13 = vmul.f32 %v3052_v0, %v729_v38 }
 0x1eb   :  { %2122 = vmatpush3.bf16.msra.mxu0 %v1420_v39  ;;  %v480_v39 = vmul.f32 %v3050_v50, %v3737_v62  ;;  %v3753_v62 = vld [vmem:[#allocation43_spill] sm:$0xff] }
 0x1ee   :  { %v1228_v18 = vpop.permute.xlu1 %1227 }
 0x1ef   :  { %v1313_v45 = vadd.f32 %v1228_v18, %v865_v44  ;;  %v868_v44 = vadd.f32 %v804_v13, %v480_v39  ;;  %v821_v13 = vadd.f32 %v757_v11, %v433_v33  ;;  %v805_v39 = vmul.f32 %v3052_v0, %v3753_v62  ;;  %v2266_v33 = vld [vmem:[%s3589_s3 + $0x44] ss:$16 sps:$4 sm:$0xff]   ;;  %v2270_v11 = vld [vmem:[%s3589_s3 + $0x40] ss:$16 sps:$4 sm:$0xff]   ;;  %v2295_v62 = vld [vmem:[%s3589_s3 + $0xa8] ss:$16 sps:$4 sm:$0xff]  }
 0x1f1   :  { %v1377_v32 = vmax.f32 %v1313_v45, 0.0  ;;  %v3739_v45 = vld [vmem:[#allocation41_spill] sm:$0xff]  ;;  %v1316_v38 = vadd.f32 %v1243_v48, %v868_v44  ;;  %v3754_v48 = vld [vmem:[#allocation44_spill] sm:$0xff] }
 0x1f2   :  { %v1148_v28 = vpop.permute.xlu1 %1147  ;;  %v803_v19 = vmul.f32 %v3052_v0, %v3739_v45  ;;  %v482_v45 = vmul.f32 %v3050_v50, %v3754_v48 }
 0x1f3   :  { %v1444_v4 = vpack.c.bf16 %v1378_v43, %v1377_v32  ;;  %v1297_v31 = vadd.f32 %v1148_v28, %v849_v25  ;;  %v3741_v43 = vld [vmem:[#allocation32_spill] sm:$0xff]  ;;  %v1088_v28 = vpop.permute.xlu0 %1087  ;;  %v1380_v29 = vmax.f32 %v1316_v38, 0.0 }
 0x1f4   :  { %v867_v16 = vadd.f32 %v803_v19, %v479_v55  ;;  %v464_v32 = vmul.f32 %v3050_v50, %v3741_v43  ;;  %v3755_v38 = vld [vmem:[#allocation76_spill] sm:$0xff] }
 0x1f5   :  { %2185 = vmatprep.subr.bf16.mxu1 %v1444_v4  ;;  %v1361_v15 = vmax.f32 %v1297_v31, 0.0  ;;  %v3743_v4 = vld [vmem:[#allocation73_spill] sm:$0xff]  ;;  %v3745_v31 = vld [vmem:[#allocation24_spill] sm:$0xff] }
 0x1f6   :  { %v1153_v49 = vpop.permute.xlu1 %1152  ;;  %v463_v25 = vmul.f32 %v3050_v50, %v3743_v4  ;;  %v852_v1 = vadd.f32 %v788_v63, %v464_v32  ;;  %v3757_v32 = vld [vmem:[#allocation35_spill] sm:$0xff] }
 0x1f7   :  { %v1298_v42 = vadd.f32 %v1153_v49, %v850_v46  ;;  %v450_v46 = vmul.f32 %v3050_v50, %v3745_v31  ;;  %v3746_v49 = vld [vmem:[#allocation25_spill] sm:$0xff] }
 0x1f8   :  { %v851_v26 = vadd.f32 %v787_v22, %v463_v25  ;;  %v774_v21 = vmul.f32 %v3052_v0, %v3746_v49 }
 0x1f9   :  { %v1362_v54 = vmax.f32 %v1298_v42, 0.0  ;;  %v1008_v42 = vpop.permute.xlu0 %1007 }
 0x1fa   :  { %v1083_v37 = vpop.permute.xlu1 %1082  ;;  %v838_v52 = vadd.f32 %v774_v21, %v450_v46  ;;  %v1269_v55 = vadd.f32 %v1008_v42, %v821_v13  ;;  %v2290_v13 = vld [vmem:[%s3589_s3 + $0xc4] ss:$16 sps:$4 sm:$0xff]  }
 0x1fb   :  { %v1436_v7 = vpack.c.bf16 %v1362_v54, %v1361_v15  ;;  %v1284_v61 = vadd.f32 %v1083_v37, %v836_v6  ;;  %v837_v15 = vadd.f32 %v773_v58, %v449_v59  ;;  %v3750_v6 = vld [vmem:[#allocation14_spill] sm:$0xff]  ;;  %v3751_v37 = vld [vmem:[#allocation15_spill] sm:$0xff] }
 0x1fc   :  { %v434_v20 = vmul.f32 %v3050_v50, %v3750_v6  ;;  %v758_v5 = vmul.f32 %v3052_v0, %v3751_v37  ;;  %v1333_v63 = vmax.f32 %v1269_v55, 0.0  ;;  %v2274_v6 = vld [vmem:[%s3589_s3 + $0x4c] ss:$16 sps:$4 sm:$0xff]   ;;  %v2277_v37 = vld [vmem:[%s3589_s3 + $0x48] ss:$16 sps:$4 sm:$0xff]  }
 0x1fd   :  { %v1348_v36 = vmax.f32 %v1284_v61, 0.0  ;;  %2186 = vmatpush3.bf16.msra.mxu1 %v1436_v7  ;;  %v1285_v7 = vadd.f32 %v1088_v28, %v837_v15  ;;  %v790_v28 = vmul.f32 %v3052_v0, %v3757_v32  ;;  %v2271_v15 = vld [vmem:[%s3589_s3 + $0x28] ss:$16 sps:$4 sm:$0xff]   ;;  %v2302_v55 = vld [vmem:[%s3589_s3 + $0xec] ss:$16 sps:$4 sm:$0xff]  }
 0x1fe   :  { %v1003_v24 = vpop.permute.xlu1 %1002 }
 0x1ff   :  { %v1429_v10 = vpack.c.bf16 %v1348_v36, %v1347_v3  ;;  %v1268_v2 = vadd.f32 %v1003_v24, %v820_v9  ;;  %v3752_v9 = vld [vmem:[#allocation84_spill] sm:$0xff]  ;;  %v1349_v14 = vmax.f32 %v1285_v7, 0.0  ;;  %v2280_v7 = vld [vmem:[%s3589_s3 + $0x6c] ss:$16 sps:$4 sm:$0xff]  }
 0x200   :  { %v481_v24 = vmul.f32 %v3050_v50, %v3752_v9  ;;  %v2288_v9 = vld [vmem:[%s3589_s3 + $0xa0] ss:$16 sps:$4 sm:$0xff]  }
 0x201   :  { %v1332_v12 = vmax.f32 %v1268_v2, 0.0  ;;  %2123 = vmatprep.subr.bf16.mxu0 %v1429_v10 }
 0x203   :  { %v1421_v18 = vpack.c.bf16 %v1332_v12, %v1331_v41  ;;  %v737_v47 = vpop.permute.xlu1 %736  ;;  %v1248_v41 = vpop.permute.xlu0 %1247  ;;  %v822_v12 = vadd.f32 %v758_v5, %v434_v20  ;;  %v2276_v20 = vld [vmem:[%s3589_s3 + $0x60] ss:$16 sps:$4 sm:$0xff]   ;;  %v2278_v5 = vld [vmem:[%s3589_s3 + $0x84] ss:$16 sps:$4 sm:$0xff]  }
 0x204   :  { %v806_v44 = vmul.f32 %v3052_v0, %v737_v47  ;;  %v465_v47 = vmul.f32 %v3050_v50, %v3758_v60 }
 0x205   :  { %2124 = vmatpush3.bf16.msra.mxu0 %v1421_v18 }
 0x208   :  { %v1238_v57 = vpop.permute.xlu1 %1237 }
 0x209   :  { %v1315_v27 = vadd.f32 %v1238_v57, %v867_v16  ;;  %v789_v16 = vmul.f32 %v3052_v0, %v3755_v38  ;;  %v869_v57 = vadd.f32 %v805_v39, %v481_v24  ;;  %v2289_v24 = vld [vmem:[%s3589_s3 + $0x88] ss:$16 sps:$4 sm:$0xff]   ;;  %v2296_v39 = vld [vmem:[%s3589_s3 + $0xe4] ss:$16 sps:$4 sm:$0xff]  }
 0x20b   :  { %v1379_v17 = vmax.f32 %v1315_v27, 0.0  ;;  %v3756_v27 = vld [vmem:[#allocation34_spill] sm:$0xff]  ;;  %v1317_v4 = vadd.f32 %v1248_v41, %v869_v57  ;;  %v853_v23 = vadd.f32 %v789_v16, %v465_v47  ;;  %v2298_v41 = vld [vmem:[%s3589_s3 + $0xcc] ss:$16 sps:$4 sm:$0xff]  }
 0x20c   :  { %v1158_v53 = vpop.permute.xlu1 %1157  ;;  %v466_v43 = vmul.f32 %v3050_v50, %v3756_v27  ;;  %v2263_v50 = vld [vmem:[%s3589_s3 + $0x24] ss:$16 sps:$4 sm:$0xff]  }
 0x20d   :  { %v1445_v51 = vpack.c.bf16 %v1380_v29, %v1379_v17  ;;  %v1299_v34 = vadd.f32 %v1158_v53, %v851_v26  ;;  %v870_v17 = vadd.f32 %v806_v44, %v482_v45  ;;  %v1168_v29 = vpop.permute.xlu0 %1167  ;;  %v2257_v26 = vld [vmem:[%s3589_s3] ss:$16 sps:$4 sm:$0xff]   ;;  %v1381_v31 = vmax.f32 %v1317_v4, 0.0  ;;  %v2304_v44 = vld [vmem:[%s3589_s3 + $0xe8] ss:$16 sps:$4 sm:$0xff]  }
 0x20e   :  { %v1301_v46 = vadd.f32 %v1168_v29, %v853_v23  ;;  %v854_v49 = vadd.f32 %v790_v28, %v466_v43 }
 0x20f   :  { %2187 = vmatprep.subr.bf16.mxu1 %v1445_v51  ;;  %v1363_v61 = vmax.f32 %v1299_v34, 0.0 }
 0x210   :  { %v1163_v30 = vpop.permute.xlu1 %1162  ;;  %v1365_v34 = vmax.f32 %v1301_v46, 0.0 }
 0x211   :  { %v1300_v54 = vadd.f32 %v1163_v30, %v852_v1  ;;  %v2260_v30 = vld [vmem:[%s3589_s3 + $0x8] ss:$16 sps:$4 sm:$0xff]  }
 0x213   :  { %v1364_v3 = vmax.f32 %v1300_v54, 0.0  ;;  %v2272_v54 = vld [vmem:[%s3589_s3 + $0x64] ss:$16 sps:$4 sm:$0xff]  }
 0x214   :  { %v1093_v36 = vpop.permute.xlu1 %1092 }
 0x215   :  { %v1437_v10 = vpack.c.bf16 %v1364_v3, %v1363_v61  ;;  %v1286_v2 = vadd.f32 %v1093_v36, %v838_v52  ;;  %v2282_v61 = vld [vmem:[%s3589_s3 + $0x80] ss:$16 sps:$4 sm:$0xff]   ;;  %v2283_v3 = vld [vmem:[%s3589_s3 + $0x68] ss:$16 sps:$4 sm:$0xff]   ;;  %v2284_v52 = vld [vmem:[%s3589_s3 + $0xa4] ss:$16 sps:$4 sm:$0xff]  }
 0x216   :  { %v2286_v36 = vld [vmem:[%s3589_s3 + $0x8c] ss:$16 sps:$4 sm:$0xff]  }
 0x217   :  { %v1350_v18 = vmax.f32 %v1286_v2, 0.0  ;;  %2188 = vmatpush3.bf16.msra.mxu1 %v1437_v10  ;;  %v2292_v10 = vld [vmem:[%s3589_s3 + $0xac] ss:$16 sps:$4 sm:$0xff]   ;;  %v2294_v2 = vld [vmem:[%s3589_s3 + $0xc0] ss:$16 sps:$4 sm:$0xff]  }
 0x218   :  { %v1013_v19 = vpop.permute.xlu1 %1012 }
 0x219   :  { %v1430_v8 = vpack.c.bf16 %v1350_v18, %v1349_v14  ;;  %v1270_v22 = vadd.f32 %v1013_v19, %v822_v12  ;;  %v2300_v12 = vld [vmem:[%s3589_s3 + $0xe0] ss:$16 sps:$4 sm:$0xff]   ;;  %v2301_v14 = vld [vmem:[%s3589_s3 + $0xc8] ss:$16 sps:$4 sm:$0xff]   ;;  %v1466_v18 = vpop.permute.xlu0 %1465  ;;  %s2335_s3 = smov [#allocation3]  }
 0x21a   :  { %s2070_s27 = sshll.u32 %s2335_s3, 4  ;;  %s2071_s27 = int_to_ptr.vmem [resolvable:$true] %s2070_s27 }
 0x21b   :  { %v1334_v25 = vmax.f32 %v1270_v22, 0.0  ;;  %2125 = vmatprep.subr.bf16.mxu0 %v1430_v8  ;;  %s2309_s28 = scalar_lea.vmem %s2071_s27, 16  ;;  %s2313_s0 = scalar_lea.vmem %s2071_s27, 32 }
 0x21c   :  { %v1253_v53 = vpop.permute.xlu1 %1252  ;;  %p2310_p0 = scmp.ne.s32.totalorder %s2071_s27, %s2309_s28  ;;  %p2314_p1 = scmp.lt.s32.totalorder %s2071_s27, %s2071_s27 }
 0x21d   :  { %v1422_v58 = vpack.c.bf16 %v1334_v25, %v1333_v63  ;;  %v1318_v51 = vadd.f32 %v1253_v53, %v870_v17  ;;  %v1476_v45 = vpop.permute.xlu0 %1475  ;;  %p2315_p2 = scmp.lt.s32.totalorder %s2313_s0, %s2309_s28 }
 0x21f   :  { %v1382_v0 = vmax.f32 %v1318_v51, 0.0  ;;  %2126 = vmatpush3.bf16.msra.mxu0 %v1422_v58  ;;  %p2316_p3 = por %p2315_p2, %p2314_p1 }
 0x220   :  { %v1173_v21 = vpop.permute.xlu1 %1172 }
 0x221   :  { %v1446_v56 = vpack.c.bf16 %v1382_v0, %v1381_v31  ;;  %v1302_v59 = vadd.f32 %v1173_v21, %v854_v49  ;;  %v3527_v38 = vpop.permute.xlu0 %1485  ;;  %p2317_p4 = pnand %p2316_p3, %p2310_p0 }
 0x222   :  { %1736 = vmatmul.mubr.bf16.vlgmr.msra.gmra.mrb[0].mxu0 %v2257_v26 }
 0x223   :  { %v1366_v1 = vmax.f32 %v1302_v59, 0.0  ;;  %2189 = vmatprep.subr.bf16.mxu1 %v1446_v56  ;;  %1743 = vmatprep.mubr.bf16.mxu0 %v2263_v50 }
 0x224   :  { %v1471_v48 = vpop.permute.xlu1 %1470 }
 0x225   :  { %v1438_v42 = vpack.c.bf16 %v1366_v1, %v1365_v34  ;;  %v1937_v57 = vpop.permute.xlu0 %1936 }
 0x227   :  { %2190 = vmatpush3.bf16.msra.mxu1 %v1438_v42 }
 0x228   :  { %v1481_v19 = vpop.permute.xlu1 %1480 }
 0x229   :  { %v1942_v22 = vpop.permute.xlu0 %1941 }
 0x22a   :  { %1744 = vmatmul.mubr.bf16.gmra.mrb[4].mxu0 %v2265_v40  ;;  %1833 = vmatmul.mubr.bf16.vlgmr.msra.gmra.mrb[0].mxu1 %v2260_v30 }
 0x22b   :  { %1751 = vmatprep.mubr.bf16.mxu0 %v2266_v33  ;;  %1840 = vmatprep.mubr.bf16.mxu1 %v2268_v35 }
 0x22c   :  { %v1932_v16 = vpop.permute.xlu1 %1931 }
 0x22d   :  { %v3533_v43 = vpop.permute.xlu0 %1946 }
 0x230   :  { %v3529_v8 = vpop.permute.xlu1 %1490 }
 0x231   :  { %v3537_v28 = vpop.permute.xlu0 %1951 }
 0x232   :  { %1752 = vmatmul.mubr.bf16.gmra.mrb[8].mxu0 %v2270_v11  ;;  %1841 = vmatmul.mubr.bf16.gmra.mrb[4].mxu1 %v2271_v15 }
 0x233   :  { %1759 = vmatprep.mubr.bf16.mxu0 %v2272_v54  ;;  %1848 = vmatprep.mubr.bf16.mxu1 %v2274_v6 }
 0x234   :  { %v3531_v27 = vpop.permute.xlu1 %1495 }
 0x235   :  { %v3541_v53 = vpop.permute.xlu0 %1956 }
 0x238   :  { %v3535_v32 = vpop.permute.xlu1 %1500 }
 0x239   :  { %v3545_v35 = vpop.permute.xlu0 %1961 }
 0x23a   :  { %1760 = vmatmul.mubr.bf16.gmra.mrb[12].mxu0 %v2276_v20  ;;  %1849 = vmatmul.mubr.bf16.gmra.mrb[8].mxu1 %v2277_v37 }
 0x23b   :  { %1767 = vmatprep.mubr.bf16.mxu0 %v2278_v5  ;;  %1856 = vmatprep.mubr.bf16.mxu1 %v2280_v7 }
 0x23c   :  { %v3539_v47 = vpop.permute.xlu1 %1505 }
 0x240   :  { %v3543_v23 = vpop.permute.xlu1 %1510 }
 0x242   :  { %1768 = vmatmul.mubr.bf16.gmra.mrb[16].mxu0 %v2282_v61  ;;  %1857 = vmatmul.mubr.bf16.gmra.mrb[12].mxu1 %v2283_v3 }
 0x243   :  { %1775 = vmatprep.mubr.bf16.mxu0 %v2284_v52  ;;  %1864 = vmatprep.mubr.bf16.mxu1 %v2286_v36 }
 0x244   :  { %v3547_v11 = vpop.permute.xlu1 %1515 }
 0x24a   :  { %1776 = vmatmul.mubr.bf16.gmra.mrb[20].mxu0 %v2288_v9  ;;  %1865 = vmatmul.mubr.bf16.gmra.mrb[16].mxu1 %v2289_v24 }
 0x24b   :  { %1783 = vmatprep.mubr.bf16.mxu0 %v2290_v13  ;;  %1872 = vmatprep.mubr.bf16.mxu1 %v2292_v10 }
 0x252   :  { %1784 = vmatmul.mubr.bf16.gmra.mrb[24].mxu0 %v2294_v2  ;;  %1873 = vmatmul.mubr.bf16.gmra.mrb[20].mxu1 %v2295_v62 }
 0x253   :  { %1791 = vmatprep.mubr.bf16.mxu0 %v2296_v39  ;;  %1880 = vmatprep.mubr.bf16.mxu1 %v2298_v41 }
 0x25a   :  { %1792 = vmatmul.mubr.bf16.gmra.mrb[28].mxu0 %v2300_v12  ;;  %1881 = vmatmul.mubr.bf16.gmra.mrb[24].mxu1 %v2301_v14  ;;  %v3549_v14 = vpop.permute.xlu0 %1966 }
 0x25b   :  { %1888 = vmatprep.mubr.bf16.mxu1 %v2302_v55  ;;  %v3551_v55 = vpop.permute.xlu1 %1520 }
 0x262   :  { %1889 = vmatmul.mubr.bf16.gmra.mrb[28].mxu1 %v2304_v44 }
 0x2f5   :  { %v2127_v60 = vpop.f32.mrb[0].mxu0 }
 0x2f6   :  { %v2128_v63 = vpop.f32.mrb[1].mxu0 }
 0x2f7   :  { %v2129_v4 = vadd.f32 %v2128_v63, %v2127_v60  ;;  %v2130_v25 = vpop.f32.mrb[2].mxu0 }
 0x2f8   :  { %v2131_v17 = vpop.f32.mrb[3].mxu0 }
 0x2f9   :  { %v2132_v29 = vadd.f32 %v2131_v17, %v2130_v25  ;;  %v1738_v46 = vadd.f32 %v2129_v4, %v1466_v18 }
 0x2fb   :  { %v1741_v34 = vadd.f32 %v2132_v29, %v1471_v48 }
 0x2fd   :  { %v2133_v58 = vpop.f32.mrb[4].mxu0  ;;  %v2191_v51 = vpop.f32.mrb[0].mxu1 }
 0x2fe   :  { %v2134_v26 = vpop.f32.mrb[5].mxu0  ;;  %v2192_v31 = vpop.f32.mrb[1].mxu1 }
 0x2ff   :  { %v2135_v0 = vadd.f32 %v2134_v26, %v2133_v58  ;;  %v2193_v49 = vadd.f32 %v2192_v31, %v2191_v51  ;;  %v2136_v50 = vpop.f32.mrb[6].mxu0  ;;  %v2194_v21 = vpop.f32.mrb[2].mxu1 }
 0x300   :  { %v2137_v56 = vpop.f32.mrb[7].mxu0  ;;  %v2195_v59 = vpop.f32.mrb[3].mxu1 }
 0x301   :  { %v1835_v1 = vadd.f32 %v2193_v49, %v1738_v46  ;;  %v2138_v42 = vadd.f32 %v2137_v56, %v2136_v50  ;;  %v2196_v30 = vadd.f32 %v2195_v59, %v2194_v21  ;;  %v1746_v20 = vadd.f32 %v2135_v0, %v1476_v45  ;;  %v1972_v56 = vpop.permute.xlu0 %1971  ;;  %v3556_v59 = vpop.permute.xlu1 %1525 }
 0x303   :  { %v1897_v40 = vmax.f32 %v1835_v1, 0.0  ;;  %v1838_v33 = vadd.f32 %v2196_v30, %v1741_v34  ;;  %v1749_v39 = vadd.f32 %v2138_v42, %v1481_v19 }
 0x305   :  { %v1898_v15 = vmax.f32 %v1838_v33, 0.0  ;;  %v2139_v54 = vpop.f32.mrb[8].mxu0  ;;  %v2197_v6 = vpop.f32.mrb[4].mxu1  ;;  %v2009_v7 = vmul.f32 %v1932_v16, %v1897_v40 }
 0x306   :  { %v2140_v37 = vpop.f32.mrb[9].mxu0  ;;  %v2198_v5 = vpop.f32.mrb[5].mxu1 }
 0x307   :  { %v2010_v61 = vmul.f32 %v1937_v57, %v1898_v15  ;;  %v2141_v3 = vadd.f32 %v2140_v37, %v2139_v54  ;;  %v2199_v52 = vadd.f32 %v2198_v5, %v2197_v6  ;;  %v2142_v36 = vpop.f32.mrb[10].mxu0  ;;  %v2200_v9 = vpop.f32.mrb[6].mxu1 }
 0x308   :  { %v2143_v24 = vpop.f32.mrb[11].mxu0  ;;  %v2201_v13 = vpop.f32.mrb[7].mxu1 }
 0x309   :  { %v2025_v10 = vadd.f32 %v2010_v61, %v2009_v7  ;;  %v1843_v2 = vadd.f32 %v2199_v52, %v1746_v20  ;;  %v2144_v62 = vadd.f32 %v2143_v24, %v2142_v36  ;;  %v2202_v41 = vadd.f32 %v2201_v13, %v2200_v9  ;;  %v1977_v9 = vpop.permute.xlu0 %1976 }
 0x30a   :  { %v1754_v63 = vadd.f32 %v2141_v3, %v3527_v38 }
 0x30b   :  { %v1899_v12 = vmax.f32 %v1843_v2, 0.0  ;;  %v1846_v44 = vadd.f32 %v2202_v41, %v1749_v39  ;;  %v1757_v31 = vadd.f32 %v2144_v62, %v3529_v8 }
 0x30d   :  { %v2011_v18 = vmul.f32 %v1942_v22, %v1899_v12  ;;  %v2145_v48 = vpop.f32.mrb[12].mxu0  ;;  %v2203_v45 = vpop.f32.mrb[8].mxu1  ;;  %v1900_v16 = vmax.f32 %v1846_v44, 0.0 }
 0x30e   :  { %v2146_v57 = vpop.f32.mrb[13].mxu0  ;;  %v2204_v60 = vpop.f32.mrb[9].mxu1 }
 0x30f   :  { %v2026_v4 = vadd.f32 %v2025_v10, %v2011_v18  ;;  %v2147_v25 = vadd.f32 %v2146_v57, %v2145_v48  ;;  %v2205_v17 = vadd.f32 %v2204_v60, %v2203_v45  ;;  %v2148_v29 = vpop.f32.mrb[14].mxu0  ;;  %v2206_v19 = vpop.f32.mrb[10].mxu1  ;;  %v2012_v58 = vmul.f32 %v3533_v43, %v1900_v16 }
 0x310   :  { %v2149_v51 = vpop.f32.mrb[15].mxu0  ;;  %v2207_v26 = vpop.f32.mrb[11].mxu1 }
 0x311   :  { %v1851_v46 = vadd.f32 %v2205_v17, %v1754_v63  ;;  %v2150_v22 = vadd.f32 %v2149_v51, %v2148_v29  ;;  %v2208_v0 = vadd.f32 %v2207_v26, %v2206_v19  ;;  %v2027_v49 = vadd.f32 %v2026_v4, %v2012_v58  ;;  %v1982_v19 = vpop.permute.xlu0 %1981 }
 0x312   :  { %v1762_v43 = vadd.f32 %v2147_v25, %v3531_v27  ;;  %v3562_v27 = vpop.permute.xlu1 %1530 }
 0x313   :  { %v1901_v50 = vmax.f32 %v1851_v46, 0.0  ;;  %v1854_v21 = vadd.f32 %v2208_v0, %v1757_v31 }
 0x315   :  { %v2013_v38 = vmul.f32 %v3537_v28, %v1901_v50  ;;  %v1902_v34 = vmax.f32 %v1854_v21, 0.0  ;;  %v2151_v1 = vpop.f32.mrb[16].mxu0  ;;  %v2209_v42 = vpop.f32.mrb[12].mxu1  ;;  %v1765_v28 = vadd.f32 %v2150_v22, %v3535_v32 }
 0x316   :  { %v2152_v30 = vpop.f32.mrb[17].mxu0  ;;  %v2210_v40 = vpop.f32.mrb[13].mxu1 }
 0x317   :  { %v2028_v33 = vadd.f32 %v2027_v49, %v2013_v38  ;;  %v2014_v8 = vmul.f32 %v3541_v53, %v1902_v34  ;;  %v2153_v15 = vadd.f32 %v2152_v30, %v2151_v1  ;;  %v2211_v54 = vadd.f32 %v2210_v40, %v2209_v42  ;;  %v2154_v6 = vpop.f32.mrb[18].mxu0  ;;  %v2212_v20 = vpop.f32.mrb[14].mxu1 }
 0x318   :  { %v2155_v37 = vpop.f32.mrb[19].mxu0  ;;  %v2213_v5 = vpop.f32.mrb[15].mxu1 }
 0x319   :  { %v2029_v7 = vadd.f32 %v2028_v33, %v2014_v8  ;;  %v1859_v61 = vadd.f32 %v2211_v54, %v1762_v43  ;;  %v2156_v3 = vadd.f32 %v2155_v37, %v2154_v6  ;;  %v2214_v52 = vadd.f32 %v2213_v5, %v2212_v20  ;;  %v1536_v58 = vpop.permute.xlu1 %1535  ;;  %v1987_v8 = vpop.permute.xlu0 %1986 }
 0x31a   :  { %v1770_v41 = vadd.f32 %v2153_v15, %v3539_v47 }
 0x31b   :  { %v1903_v36 = vmax.f32 %v1859_v61, 0.0  ;;  %v1862_v24 = vadd.f32 %v2214_v52, %v1765_v28  ;;  %v1773_v60 = vadd.f32 %v2156_v3, %v3543_v23 }
 0x31d   :  { %v2015_v13 = vmul.f32 %v3545_v35, %v1903_v36  ;;  %v2157_v53 = vpop.f32.mrb[20].mxu0  ;;  %v2215_v10 = vpop.f32.mrb[16].mxu1  ;;  %v1904_v2 = vmax.f32 %v1862_v24, 0.0 }
 0x31e   :  { %v2158_v62 = vpop.f32.mrb[21].mxu0  ;;  %v2216_v39 = vpop.f32.mrb[17].mxu1 }
 0x31f   :  { %v2030_v12 = vadd.f32 %v2029_v7, %v2015_v13  ;;  %v2159_v44 = vadd.f32 %v2158_v62, %v2157_v53  ;;  %v2217_v18 = vadd.f32 %v2216_v39, %v2215_v10  ;;  %v2160_v48 = vpop.f32.mrb[22].mxu0  ;;  %v2218_v32 = vpop.f32.mrb[18].mxu1  ;;  %v2016_v45 = vmul.f32 %v3549_v14, %v1904_v2 }
 0x320   :  { %v2161_v16 = vpop.f32.mrb[23].mxu0  ;;  %v2219_v57 = vpop.f32.mrb[19].mxu1 }
 0x321   :  { %v1867_v63 = vadd.f32 %v2217_v18, %v1770_v41  ;;  %v2162_v35 = vadd.f32 %v2161_v16, %v2160_v48  ;;  %v2220_v4 = vadd.f32 %v2219_v57, %v2218_v32  ;;  %v2031_v25 = vadd.f32 %v2030_v12, %v2016_v45  ;;  %v1541_v15 = vpop.permute.xlu1 %1540 }
 0x322   :  { %v1778_v46 = vadd.f32 %v2159_v44, %v3547_v11  ;;  %v1992_v44 = vpop.permute.xlu0 %1991 }
 0x323   :  { %v1905_v17 = vmax.f32 %v1867_v63, 0.0  ;;  %v1870_v29 = vadd.f32 %v2220_v4, %v1773_v60 }
 0x325   :  { %v2017_v47 = vmul.f32 %v1972_v56, %v1905_v17  ;;  %v1906_v51 = vmax.f32 %v1870_v29, 0.0  ;;  %v2163_v26 = vpop.f32.mrb[24].mxu0  ;;  %v2221_v31 = vpop.f32.mrb[20].mxu1  ;;  %v1781_v56 = vadd.f32 %v2162_v35, %v3551_v55 }
 0x326   :  { %v2164_v22 = vpop.f32.mrb[25].mxu0  ;;  %v2222_v14 = vpop.f32.mrb[21].mxu1 }
 0x327   :  { %v2032_v0 = vadd.f32 %v2031_v25, %v2017_v47  ;;  %v2018_v49 = vmul.f32 %v1977_v9, %v1906_v51  ;;  %v2165_v50 = vadd.f32 %v2164_v22, %v2163_v26  ;;  %v2223_v23 = vadd.f32 %v2222_v14, %v2221_v31  ;;  %v2166_v21 = vpop.f32.mrb[26].mxu0  ;;  %v2224_v38 = vpop.f32.mrb[22].mxu1 }
 0x328   :  { %v2167_v34 = vpop.f32.mrb[27].mxu0  ;;  %v2225_v1 = vpop.f32.mrb[23].mxu1 }
 0x329   :  { %v2033_v42 = vadd.f32 %v2032_v0, %v2018_v49  ;;  %v1875_v43 = vadd.f32 %v2223_v23, %v1778_v46  ;;  %v2168_v30 = vadd.f32 %v2167_v34, %v2166_v21  ;;  %v2226_v40 = vadd.f32 %v2225_v1, %v2224_v38  ;;  %v1997_v32 = vpop.permute.xlu1 %1996  ;;  %v2002_v51 = vpop.permute.xlu0 %2001  ;;  %v3759_v34 = vld [vmem:[#allocation79_spill] sm:$0xff] }
 0x32a   :  { %v1786_v61 = vadd.f32 %v2165_v50, %v3556_v59  ;;  %v3760_v1 = vsub.s32 0, %v3759_v34 }
 0x32b   :  { %v1907_v33 = vmax.f32 %v1875_v43, 0.0  ;;  %v1878_v11 = vadd.f32 %v2226_v40, %v1781_v56  ;;  %v1789_v53 = vadd.f32 %v2168_v30, %v3562_v27 }
 0x32d   :  { %v2019_v54 = vmul.f32 %v1982_v19, %v1907_v33  ;;  %v2169_v6 = vpop.f32.mrb[28].mxu0  ;;  %v2227_v20 = vpop.f32.mrb[24].mxu1  ;;  %v1908_v37 = vmax.f32 %v1878_v11, 0.0 }
 0x32e   :  { %v2170_v5 = vpop.f32.mrb[29].mxu0  ;;  %v2228_v7 = vpop.f32.mrb[25].mxu1 }
 0x32f   :  { %v2034_v3 = vadd.f32 %v2033_v42, %v2019_v54  ;;  %v2171_v28 = vadd.f32 %v2170_v5, %v2169_v6  ;;  %v2229_v52 = vadd.f32 %v2228_v7, %v2227_v20  ;;  %v2172_v36 = vpop.f32.mrb[30].mxu0  ;;  %v2230_v9 = vpop.f32.mrb[26].mxu1  ;;  %v2020_v24 = vmul.f32 %v1987_v8, %v1908_v37 }
 0x330   :  { %v2173_v55 = vpop.f32.mrb[31].mxu0  ;;  %v2231_v13 = vpop.f32.mrb[27].mxu1 }
 0x331   :  { %v1883_v10 = vadd.f32 %v2229_v52, %v1786_v61  ;;  %v2174_v2 = vadd.f32 %v2173_v55, %v2172_v36  ;;  %v2232_v62 = vadd.f32 %v2231_v13, %v2230_v9  ;;  %v2035_v39 = vadd.f32 %v2034_v3, %v2020_v24  ;;  %v2007_v46 = vpop.permute.xlu1 %2006  ;;  %v2050_v21 = vpop.permute.xlu0 %2049 }
 0x332   :  { %v1794_v16 = vadd.f32 %v2171_v28, %v1536_v58  ;;  %v2055_v42 = vrot.slane %v2050_v21, %v3760_v1 }
 0x333   :  { %v1909_v41 = vmax.f32 %v1883_v10, 0.0  ;;  %v1886_v12 = vadd.f32 %v2232_v62, %v1789_v53  ;;  %v1797_v25 = vadd.f32 %v2174_v2, %v1541_v15 }
 0x335   :  { %v2021_v18 = vmul.f32 %v1992_v44, %v1909_v41  ;;  %v1910_v48 = vmax.f32 %v1886_v12, 0.0  ;;  %v2233_v59 = vpop.f32.mrb[28].mxu1 }
 0x336   :  { %v2234_v45 = vpop.f32.mrb[29].mxu1 }
 0x337   :  { %v2036_v57 = vadd.f32 %v2035_v39, %v2021_v18  ;;  %v2022_v60 = vmul.f32 %v1997_v32, %v1910_v48  ;;  %v2235_v63 = vadd.f32 %v2234_v45, %v2233_v59  ;;  %v2236_v35 = vpop.f32.mrb[30].mxu1 }
 0x338   :  { %v2237_v4 = vpop.f32.mrb[31].mxu1 }
 0x339   :  { %v2037_v27 = vadd.f32 %v2036_v57, %v2022_v60  ;;  %v1891_v17 = vadd.f32 %v2235_v63, %v1794_v16  ;;  %v2238_v29 = vadd.f32 %v2237_v4, %v2236_v35 }
 0x33b   :  { %v1911_v19 = vmax.f32 %v1891_v17, 0.0  ;;  %v1894_v47 = vadd.f32 %v2238_v29, %v1797_v25 }
 0x33d   :  { %v2023_v26 = vmul.f32 %v2002_v51, %v1911_v19  ;;  %v1912_v31 = vmax.f32 %v1894_v47, 0.0 }
 0x33f   :  { %v2038_v22 = vadd.f32 %v2037_v27, %v2023_v26  ;;  %v2024_v14 = vmul.f32 %v2007_v46, %v1912_v31 }
 0x341   :  { %v2039_v0 = vadd.f32 %v2038_v22, %v2024_v14 }
 0x343   :  { %v2040_v49 = vrot.slane %v2039_v0, 4 }
 0x345   :  { %v2041_v58 = vadd.f32 %v2040_v49, %v2039_v0 }
 0x347   :  { %v2042_v50 = vrot.slane %v2041_v58, 2 }
 0x349   :  { %v2043_v23 = vadd.f32 %v2042_v50, %v2041_v58 }
 0x34b   :  { %v2044_v38 = vrot.slane %v2043_v23, 1 }
 0x34d   :  { %v2045_v43 = vadd.f32 %v2044_v38, %v2043_v23 }
 0x34f   :  { %v2056_v30 = vadd.f32 %v2055_v42, %v2045_v43 }
 0x351   :  { %v2110_v56 = vmul.f32 -1.442695, %v2056_v30 }
 0x353   :  { %2305 = vpow2.f32 %v2110_v56 }
 0x35d   :  { %v2306_v40 = vpop.eup %2305 }
 0x35e   :  { %v2060_v33 = vadd.f32 1.0, %v2306_v40 }
 0x360   :  { %2307 = vrcp.f32 %v2060_v33 }
 0x36a   :  { %v2308_v8 = vpop.eup %2307 }
 0x36b   :  { %2063 = vst [vmem:[#allocation3] sm:$0x1] %v2308_v8 }
 0x36c   :  { %2320 = shalt.err (!%p2317_p4)
}
 0x36d   :  { %s2321_s30 = scalar_lea.hbm %s3593_s7, 16 }
 0x36e   :  { %p2322_p5 = scmp.ne.s32.totalorder %s3593_s7, %s2321_s30  ;;  %p2325_p6 = scmp.lt.u32.totalorder %s2321_s30, %s3593_s7 }
 0x370   :  { %p2327_p7 = pnand %p2325_p6, %p2322_p5 }
 0x372   :  { %2330 = shalt.err (!%p2327_p7)
}
 0x373   :  { %2073 = dma.vmem_to_hbm [thread:$0]  %s2071_s27, 16, %s3593_s7, [#allocation4]  }
 0x374   :  { %2331 = dma.done.wait [#allocation4], 16  }
 0x375   :  { %2332 = vsyncadd [#allocation4], 4294967280 }
 0x376   :  { %2077 = vsyncpa [#allocation4], 1 }

</bundles_post_ra>
